<compile_context>
chip_gen: v5e
topology: v5e:2x2
jax: 0.10.0
libtpu: 0.0.40
codegen_flags: <defaults>
</compile_context>

<pallas_src>
import functools

import jax
import jax.numpy as jnp
from jax import lax
from jax.experimental import pallas as pl
from jax.experimental.pallas import tpu as pltpu


def _self_attn_kernel(gamma_ref,         # SMEM (1,)            f32
                      xq_ref,            # VMEM (1, C, TQ)      f32  query-side x tile
                      xk_ref,            # VMEM (1, C, TK)      f32  key/value-side x tile
                      wq_ref,            # VMEM (C8p, C)        bf16 (zero-padded rows)
                      bq_ref,            # VMEM (C8p, 1)        f32
                      wkv_ref,           # VMEM (C8p + C, C)    bf16 ([Wk_pad ; Wv])
                      bv_ref,            # VMEM (C, 1)          f32
                      out_ref,           # VMEM (1, C, TQ)      f32
                      q_sc,              # VMEM (TQ, C8p)       bf16  scratch
                      m_sc,              # VMEM (TQ, 1)         f32   scratch
                      l_sc,              # VMEM (TQ, 1)         f32   scratch
                      acc_sc,            # VMEM (TQ, C)         f32   scratch
                      *, c8p):
    ki = pl.program_id(2)
    nk = pl.num_programs(2)

    # ---- once per (batch, q-tile): project Q, reset online-softmax state ----
    @pl.when(ki == 0)
    def _init():
        xq = xq_ref[0].astype(jnp.bfloat16)                              # (C, TQ)
        q = jnp.dot(wq_ref[...], xq,
                    preferred_element_type=jnp.float32) + bq_ref[...]    # (C8p, TQ)
        q_sc[...] = q.T.astype(jnp.bfloat16)                             # (TQ, C8p)
        m_sc[...] = jnp.full(m_sc.shape, -jnp.inf, jnp.float32)
        l_sc[...] = jnp.zeros(l_sc.shape, jnp.float32)
        acc_sc[...] = jnp.zeros(acc_sc.shape, jnp.float32)

    # ---- per KV tile: fused K/V projection (one wide bf16 MXU matmul) ----
    xk = xk_ref[0].astype(jnp.bfloat16)                                  # (C, TK)
    kv = jnp.dot(wkv_ref[...], xk,
                 preferred_element_type=jnp.float32)                     # (C8p + C, TK)
    k = kv[:c8p, :].astype(jnp.bfloat16)                                 # (C8p, TK) (bk dropped)
    v = (kv[c8p:, :] + bv_ref[...]).astype(jnp.bfloat16)                 # (C, TK)

    # ---- energy tile + online softmax update ----
    e = jnp.dot(q_sc[...], k, preferred_element_type=jnp.float32)        # (TQ, TK)
    m_prev = m_sc[...]
    m_new = jnp.maximum(m_prev, jnp.max(e, axis=-1, keepdims=True))      # (TQ, 1)
    alpha = jnp.exp(m_prev - m_new)
    p = jnp.exp(e - m_new)                                               # (TQ, TK) f32
    l_sc[...] = alpha * l_sc[...] + jnp.sum(p, axis=-1, keepdims=True)
    pv = lax.dot_general(p.astype(jnp.bfloat16), v,
                         (((1,), (1,)), ((), ())),                       # contract TK (no V transpose)
                         preferred_element_type=jnp.float32)             # (TQ, C)
    acc_sc[...] = alpha * acc_sc[...] + pv
    m_sc[...] = m_new

    # ---- last KV tile: normalize, residual, lane-dense (C, TQ) store ----
    @pl.when(ki == nk - 1)
    def _finalize():
        inv_l = pl.reciprocal(l_sc[...], approx=True)                    # (TQ, 1) on the EUP
        o_t = acc_sc[...] * inv_l                                        # (TQ, C)
        out_ref[0] = gamma_ref[0] * o_t.T + xq_ref[0]                    # (C, TQ)


def _pick_tile(n):
    """Largest preferred tile size that divides n (falls back to the full axis)."""
    for t in (128, 256, 512):
        if n % t == 0:
            return t
    return n


def self_attn_forward(x, wq, bq, wk, bk, wv, bv, gamma):
    """x: (B, C, W, H) float32 (NCHW, like the PyTorch module)."""
    B, C, W, H = x.shape
    N = W * H
    C8 = C // 8
    assert C8 >= 1, "in_channels must be >= 8 (as the PyTorch module requires)"
    C8p = max(8, ((C8 + 7) // 8) * 8)           # pad Q/K channel dim to a sublane multiple

    TQ = _pick_tile(N)
    TK = _pick_tile(N)

    # NCHW -> (B, C, N) is a pure reshape: no HBM transpose on input or output.
    x_bcn = x.reshape(B, C, N).astype(jnp.float32)

    # Conv2d 1x1 weights (Cout, Cin, 1, 1) -> (Cout, Cin); zero-pad Q/K rows to C8p
    # (zero padding keeps the energy exact).  K and V weights are fused vertically.
    wq2 = wq[:, :, 0, 0]
    wk2 = wk[:, :, 0, 0]
    wv2 = wv[:, :, 0, 0]
    wq_p = jnp.zeros((C8p, C), jnp.float32).at[:C8, :].set(wq2).astype(jnp.bfloat16)
    bq_p = jnp.zeros((C8p, 1), jnp.float32).at[:C8, 0].set(bq)
    wk_p = jnp.zeros((C8p, C), jnp.float32).at[:C8, :].set(wk2)
    wkv = jnp.concatenate([wk_p, wv2.astype(jnp.float32)], axis=0).astype(jnp.bfloat16)
    bv2 = bv.reshape(C, 1).astype(jnp.float32)
    del bk  # bk cancels exactly under the row softmax (constant along the key axis).
    gamma1 = gamma.reshape(1).astype(jnp.float32)

    # Explicit VMEM budget: double-buffered x/out tiles + weights + scratch + energy temps.
    f32b, bf16b = 4, 2
    est = (2 * C * TQ * f32b + 2 * C * TK * f32b + 2 * C * TQ * f32b
           + 2 * (C8p * C * bf16b + C8p * f32b + (C8p + C) * C * bf16b + C * f32b)
           + TQ * C8p * bf16b + 2 * TQ * f32b + TQ * C * f32b
           + 3 * TQ * TK * f32b)
    vmem_limit = int(min(max(2 * est, 32 * 1024 * 1024), 48 * 1024 * 1024))

    kernel = functools.partial(_self_attn_kernel, c8p=C8p)

    # NOTE: the constant-index weight/bias blocks could additionally be single-buffered
    # (pipeline_mode=pl.Buffered(1)) to save VMEM at large C; at these sizes they are
    # only a few KiB, so default buffering is kept for robustness.
    out_bcn = pl.pallas_call(
        kernel,
        out_shape=jax.ShapeDtypeStruct((B, C, N), jnp.float32),
        grid_spec=pltpu.PrefetchScalarGridSpec(
            num_scalar_prefetch=0,
            grid=(B, N // TQ, N // TK),
            in_specs=[
                pl.BlockSpec(memory_space=pltpu.MemorySpace.SMEM),          # gamma
                pl.BlockSpec((1, C, TQ), lambda b, qi, ki: (b, 0, qi)),     # x (query tile)
                pl.BlockSpec((1, C, TK), lambda b, qi, ki: (b, 0, ki)),     # x (key/value tile)
                pl.BlockSpec((C8p, C), lambda b, qi, ki: (0, 0)),           # Wq (padded)
                pl.BlockSpec((C8p, 1), lambda b, qi, ki: (0, 0)),           # bq (padded)
                pl.BlockSpec((C8p + C, C), lambda b, qi, ki: (0, 0)),       # [Wk_pad ; Wv]
                pl.BlockSpec((C, 1), lambda b, qi, ki: (0, 0)),             # bv
            ],
            out_specs=pl.BlockSpec((1, C, TQ), lambda b, qi, ki: (b, 0, qi)),
            scratch_shapes=[
                pltpu.VMEM((TQ, C8p), jnp.bfloat16),   # cached Q tile
                pltpu.VMEM((TQ, 1), jnp.float32),      # running max m
                pltpu.VMEM((TQ, 1), jnp.float32),      # running denom l
                pltpu.VMEM((TQ, C), jnp.float32),      # output accumulator
            ],
        ),
        compiler_params=pltpu.CompilerParams(
            dimension_semantics=("parallel", "parallel", "arbitrary"),
            vmem_limit_bytes=vmem_limit,
        ),
    )(gamma1, x_bcn, x_bcn, wq_p, bq_p, wkv, bv2)

    # (B, C, N) -> (B, C, W, H): pure reshape, no transpose.
    return out_bcn.reshape(B, C, W, H)


def self_attn_reference(x, wq, bq, wk, bk, wv, bv, gamma):
    """Pure-JAX (f32) replica of the PyTorch forward, for verification."""
    B, C, W, H = x.shape
    N = W * H
    wq2, wk2, wv2 = wq[:, :, 0, 0], wk[:, :, 0, 0], wv[:, :, 0, 0]
    xf = x.reshape(B, C, N)                                      # (B, C, N)
    q = jnp.einsum("oc,bcn->bon", wq2, xf) + bq[None, :, None]   # (B, C8, N)
    k = jnp.einsum("oc,bcn->bon", wk2, xf) + bk[None, :, None]
    v = jnp.einsum("oc,bcn->bon", wv2, xf) + bv[None, :, None]   # (B, C, N)
    energy = jnp.einsum("bci,bcj->bij", q, k)                    # (B, N, N)
    attn = jax.nn.softmax(energy, axis=-1)
    out = jnp.einsum("bcj,bij->bci", v, attn)                    # (B, C, N)
    out = out.reshape(B, C, W, H)
    return gamma.reshape(()) * out + x


if __name__ == "__main__":
    # Small shapes consistent with the module (C must be divisible by 8).
    B, C, W, H = 2, 32, 16, 16          # N = 256 -> grid (2, 2, 2): exercises tiling
    C8 = C // 8

    key = jax.random.PRNGKey(0)
    k_x, k_wq, k_bq, k_wk, k_bk, k_wv, k_bv = jax.random.split(key, 7)

    x = jax.random.normal(k_x, (B, C, W, H), dtype=jnp.float32)
    # Conv2d 1x1 weight layout: (Cout, Cin, 1, 1).
    wq = 0.1 * jax.random.normal(k_wq, (C8, C, 1, 1), dtype=jnp.float32)
    bq = 0.1 * jax.random.normal(k_bq, (C8,), dtype=jnp.float32)
    wk = 0.1 * jax.random.normal(k_wk, (C8, C, 1, 1), dtype=jnp.float32)
    bk = 0.1 * jax.random.normal(k_bk, (C8,), dtype=jnp.float32)
    wv = 0.1 * jax.random.normal(k_wv, (C, C, 1, 1), dtype=jnp.float32)
    bv = 0.1 * jax.random.normal(k_bv, (C,), dtype=jnp.float32)
    # Module inits gamma to 0 (out == x); use a nonzero value so the attention
    # path is actually exercised and checked.
    gamma = jnp.array([0.5], dtype=jnp.float32)

    out = jax.block_until_ready(self_attn_forward(x, wq, bq, wk, bk, wv, bv, gamma))
    ref = self_attn_reference(x, wq, bq, wk, bk, wv, bv, gamma)

    assert out.shape == (B, C, W, H)
    max_err = float(jnp.max(jnp.abs(out - ref)))
    # bf16 MXU inputs (f32 accumulation) -> loosened tolerance vs the f32 reference.
    assert jnp.allclose(out, ref, atol=2e-2, rtol=2e-2), f"mismatch vs reference (max abs err {max_err})"

    print("KERNEL_OK")
</pallas_src>

<mosaic_0001>
module attributes {stable_mosaic.version = 11 : i64} {
  func.func @_self_attn_kernel(%arg0: i32, %arg1: i32, %arg2: i32, %arg3: memref<1xf32, #tpu.memory_space<smem>>, %arg4: memref<1x32x128xf32, #tpu.memory_space<vmem>>, %arg5: memref<1x32x128xf32, #tpu.memory_space<vmem>>, %arg6: memref<8x32xbf16, #tpu.memory_space<vmem>>, %arg7: memref<8x1xf32, #tpu.memory_space<vmem>>, %arg8: memref<40x32xbf16, #tpu.memory_space<vmem>>, %arg9: memref<32x1xf32, #tpu.memory_space<vmem>>, %arg10: memref<1x32x128xf32, #tpu.memory_space<vmem>>, %arg11: memref<128x8xbf16, #tpu.memory_space<vmem>>, %arg12: memref<128x1xf32, #tpu.memory_space<vmem>>, %arg13: memref<128x1xf32, #tpu.memory_space<vmem>>, %arg14: memref<128x32xf32, #tpu.memory_space<vmem>>) attributes {dimension_semantics = [#tpu.dimension_semantics<parallel>, #tpu.dimension_semantics<parallel>, #tpu.dimension_semantics<arbitrary>], iteration_bounds = array<i64: 2, 2, 2>, scalar_prefetch = 0 : i64, scratch_operands = 4 : i64, tpu.core_type = #tpu.core_type<tc>, window_params = [{transform_indices = @transform_0, window_bounds = array<i64: 1>}, {transform_indices = @transform_1, window_bounds = array<i64: 1, 32, 128>}, {transform_indices = @transform_2, window_bounds = array<i64: 1, 32, 128>}, {pipeline_mode = #tpu.pipeline_mode<synchronous>, transform_indices = @transform_3, window_bounds = array<i64: 8, 32>}, {pipeline_mode = #tpu.pipeline_mode<synchronous>, transform_indices = @transform_4, window_bounds = array<i64: 8, 1>}, {pipeline_mode = #tpu.pipeline_mode<synchronous>, transform_indices = @transform_5, window_bounds = array<i64: 40, 32>}, {pipeline_mode = #tpu.pipeline_mode<synchronous>, transform_indices = @transform_6, window_bounds = array<i64: 32, 1>}, {transform_indices = @transform_7, window_bounds = array<i64: 1, 32, 128>}]} {
    %c0_i32 = arith.constant 0 : i32
    %0 = arith.cmpi eq, %arg2, %c0_i32 : i32
    %1 = arith.extui %0 : i1 to i32
    %c0_i32_0 = arith.constant 0 : i32
    %2 = arith.cmpi ne, %1, %c0_i32_0 : i32
    scf.if %2 {
      %c0_26 = arith.constant 0 : index
      %c0_27 = arith.constant 0 : index
      %c0_28 = arith.constant 0 : index
      %43 = vector.load %arg4[%c0_26, %c0_27, %c0_28] : memref<1x32x128xf32, #tpu.memory_space<vmem>>, vector<1x32x128xf32>
      %44 = vector.shape_cast %43 : vector<1x32x128xf32> to vector<32x128xf32>
      %45 = arith.truncf %44 : vector<32x128xf32> to vector<32x128xbf16>
      %c0_29 = arith.constant 0 : index
      %c0_30 = arith.constant 0 : index
      %46 = vector.load %arg6[%c0_29, %c0_30] : memref<8x32xbf16, #tpu.memory_space<vmem>>, vector<8x32xbf16>
      %cst_31 = arith.constant dense<0.000000e+00> : vector<8x128xf32>
      %47 = tpu.matmul %46, %45, %cst_31 {dimension_numbers = #tpu.dot_dimension_numbers<[1], [0], [0], [1], [0, 0, 1, 1], [], []>} : vector<8x32xbf16>, vector<32x128xbf16>, vector<8x128xf32> -> vector<8x128xf32>
      %c0_32 = arith.constant 0 : index
      %c0_33 = arith.constant 0 : index
      %48 = vector.load %arg7[%c0_32, %c0_33] : memref<8x1xf32, #tpu.memory_space<vmem>>, vector<8x1xf32>
      %49 = vector.broadcast %48 : vector<8x1xf32> to vector<8x128xf32>
      %50 = arith.addf %47, %49 : vector<8x128xf32>
      %51 = tpu.transpose %50, [1, 0] : vector<8x128xf32> -> vector<128x8xf32>
      %52 = arith.truncf %51 : vector<128x8xf32> to vector<128x8xbf16>
      %c0_34 = arith.constant 0 : index
      %c0_35 = arith.constant 0 : index
      %53 = vector.load %arg11[%c0_34, %c0_35] : memref<128x8xbf16, #tpu.memory_space<vmem>>, vector<128x8xbf16>
      tpu.vector_store %arg11[%c0_34, %c0_35], %52 {strides = array<i32>} : memref<128x8xbf16, #tpu.memory_space<vmem>>, vector<128x8xbf16>,
      %cst_36 = arith.constant 0xFF800000 : f32
      %54 = vector.broadcast %cst_36 : f32 to vector<128x1xf32>
      %c0_37 = arith.constant 0 : index
      %c0_38 = arith.constant 0 : index
      %55 = vector.load %arg12[%c0_37, %c0_38] : memref<128x1xf32, #tpu.memory_space<vmem>>, vector<128x1xf32>
      tpu.vector_store %arg12[%c0_37, %c0_38], %54 {strides = array<i32>} : memref<128x1xf32, #tpu.memory_space<vmem>>, vector<128x1xf32>,
      %cst_39 = arith.constant 0.000000e+00 : f32
      %56 = vector.broadcast %cst_39 : f32 to vector<128x1xf32>
      %c0_40 = arith.constant 0 : index
      %c0_41 = arith.constant 0 : index
      %57 = vector.load %arg13[%c0_40, %c0_41] : memref<128x1xf32, #tpu.memory_space<vmem>>, vector<128x1xf32>
      tpu.vector_store %arg13[%c0_40, %c0_41], %56 {strides = array<i32>} : memref<128x1xf32, #tpu.memory_space<vmem>>, vector<128x1xf32>,
      %cst_42 = arith.constant 0.000000e+00 : f32
      %58 = vector.broadcast %cst_42 : f32 to vector<128x32xf32>
      %c0_43 = arith.constant 0 : index
      %c0_44 = arith.constant 0 : index
      %59 = vector.load %arg14[%c0_43, %c0_44] : memref<128x32xf32, #tpu.memory_space<vmem>>, vector<128x32xf32>
      tpu.vector_store %arg14[%c0_43, %c0_44], %58 {strides = array<i32>} : memref<128x32xf32, #tpu.memory_space<vmem>>, vector<128x32xf32>,
    } else {
    }
    %c0 = arith.constant 0 : index
    %c0_1 = arith.constant 0 : index
    %c0_2 = arith.constant 0 : index
    %3 = vector.load %arg5[%c0, %c0_1, %c0_2] : memref<1x32x128xf32, #tpu.memory_space<vmem>>, vector<1x32x128xf32>
    %4 = vector.shape_cast %3 : vector<1x32x128xf32> to vector<32x128xf32>
    %5 = arith.truncf %4 : vector<32x128xf32> to vector<32x128xbf16>
    %c0_3 = arith.constant 0 : index
    %c0_4 = arith.constant 0 : index
    %6 = vector.load %arg8[%c0_3, %c0_4] : memref<40x32xbf16, #tpu.memory_space<vmem>>, vector<40x32xbf16>
    %cst = arith.constant dense<0.000000e+00> : vector<40x128xf32>
    %7 = tpu.matmul %6, %5, %cst {dimension_numbers = #tpu.dot_dimension_numbers<[1], [0], [0], [1], [0, 0, 1, 1], [], []>} : vector<40x32xbf16>, vector<32x128xbf16>, vector<40x128xf32> -> vector<40x128xf32>
    %8 = vector.extract_strided_slice %7 {offsets = [0, 0], sizes = [8, 128], strides = [1, 1]} : vector<40x128xf32> to vector<8x128xf32>
    %9 = arith.truncf %8 : vector<8x128xf32> to vector<8x128xbf16>
    %10 = vector.extract_strided_slice %7 {offsets = [8, 0], sizes = [32, 128], strides = [1, 1]} : vector<40x128xf32> to vector<32x128xf32>
    %c0_5 = arith.constant 0 : index
    %c0_6 = arith.constant 0 : index
    %11 = vector.load %arg9[%c0_5, %c0_6] : memref<32x1xf32, #tpu.memory_space<vmem>>, vector<32x1xf32>
    %12 = vector.broadcast %11 : vector<32x1xf32> to vector<32x128xf32>
    %13 = arith.addf %10, %12 : vector<32x128xf32>
    %14 = arith.truncf %13 : vector<32x128xf32> to vector<32x128xbf16>
    %c0_7 = arith.constant 0 : index
    %c0_8 = arith.constant 0 : index
    %15 = vector.load %arg11[%c0_7, %c0_8] : memref<128x8xbf16, #tpu.memory_space<vmem>>, vector<128x8xbf16>
    %cst_9 = arith.constant dense<0.000000e+00> : vector<128x128xf32>
    %16 = tpu.matmul %15, %9, %cst_9 {dimension_numbers = #tpu.dot_dimension_numbers<[1], [0], [0], [1], [0, 0, 1, 1], [], []>} : vector<128x8xbf16>, vector<8x128xbf16>, vector<128x128xf32> -> vector<128x128xf32>
    %c0_10 = arith.constant 0 : index
    %c0_11 = arith.constant 0 : index
    %17 = vector.load %arg12[%c0_10, %c0_11] : memref<128x1xf32, #tpu.memory_space<vmem>>, vector<128x1xf32>
    %cst_12 = arith.constant dense<0xFF800000> : vector<128xf32>
    %18 = vector.multi_reduction <maximumf>, %16, %cst_12 [1] : vector<128x128xf32> to vector<128xf32>
    %19 = vector.shape_cast %18 : vector<128xf32> to vector<128x1xf32>
    %20 = arith.maximumf %17, %19 : vector<128x1xf32>
    %21 = arith.subf %17, %20 : vector<128x1xf32>
    %22 = math.exp %21 : vector<128x1xf32>
    %23 = vector.broadcast %20 : vector<128x1xf32> to vector<128x128xf32>
    %24 = arith.subf %16, %23 : vector<128x128xf32>
    %25 = math.exp %24 : vector<128x128xf32>
    %c0_13 = arith.constant 0 : index
    %c0_14 = arith.constant 0 : index
    %26 = vector.load %arg13[%c0_13, %c0_14] : memref<128x1xf32, #tpu.memory_space<vmem>>, vector<128x1xf32>
    %27 = arith.mulf %22, %26 : vector<128x1xf32>
    %cst_15 = arith.constant dense<0.000000e+00> : vector<128xf32>
    %28 = vector.multi_reduction <add>, %25, %cst_15 [1] : vector<128x128xf32> to vector<128xf32>
    %29 = vector.shape_cast %28 : vector<128xf32> to vector<128x1xf32>
    %30 = arith.addf %27, %29 : vector<128x1xf32>
    %c0_16 = arith.constant 0 : index
    %c0_17 = arith.constant 0 : index
    %31 = vector.load %arg13[%c0_16, %c0_17] : memref<128x1xf32, #tpu.memory_space<vmem>>, vector<128x1xf32>
    tpu.vector_store %arg13[%c0_16, %c0_17], %30 {strides = array<i32>} : memref<128x1xf32, #tpu.memory_space<vmem>>, vector<128x1xf32>,
    %32 = arith.truncf %25 : vector<128x128xf32> to vector<128x128xbf16>
    %cst_18 = arith.constant dense<0.000000e+00> : vector<128x32xf32>
    %33 = tpu.matmul %32, %14, %cst_18 {dimension_numbers = #tpu.dot_dimension_numbers<[1], [1], [0], [0], [0, 0, 1, 0], [], []>} : vector<128x128xbf16>, vector<32x128xbf16>, vector<128x32xf32> -> vector<128x32xf32>
    %c0_19 = arith.constant 0 : index
    %c0_20 = arith.constant 0 : index
    %34 = vector.load %arg14[%c0_19, %c0_20] : memref<128x32xf32, #tpu.memory_space<vmem>>, vector<128x32xf32>
    %35 = vector.broadcast %22 : vector<128x1xf32> to vector<128x32xf32>
    %36 = arith.mulf %35, %34 : vector<128x32xf32>
    %37 = arith.addf %36, %33 : vector<128x32xf32>
    %c0_21 = arith.constant 0 : index
    %c0_22 = arith.constant 0 : index
    %38 = vector.load %arg14[%c0_21, %c0_22] : memref<128x32xf32, #tpu.memory_space<vmem>>, vector<128x32xf32>
    tpu.vector_store %arg14[%c0_21, %c0_22], %37 {strides = array<i32>} : memref<128x32xf32, #tpu.memory_space<vmem>>, vector<128x32xf32>,
    %c0_23 = arith.constant 0 : index
    %c0_24 = arith.constant 0 : index
    %39 = vector.load %arg12[%c0_23, %c0_24] : memref<128x1xf32, #tpu.memory_space<vmem>>, vector<128x1xf32>
    tpu.vector_store %arg12[%c0_23, %c0_24], %20 {strides = array<i32>} : memref<128x1xf32, #tpu.memory_space<vmem>>, vector<128x1xf32>,
    %c1_i32 = arith.constant 1 : i32
    %40 = arith.cmpi eq, %arg2, %c1_i32 : i32
    %41 = arith.extui %40 : i1 to i32
    %c0_i32_25 = arith.constant 0 : i32
    %42 = arith.cmpi ne, %41, %c0_i32_25 : i32
    scf.if %42 {
      %c0_26 = arith.constant 0 : index
      %c0_27 = arith.constant 0 : index
      %43 = vector.load %arg13[%c0_26, %c0_27] : memref<128x1xf32, #tpu.memory_space<vmem>>, vector<128x1xf32>
      %44 = tpu.reciprocal %43 {approx = true} : vector<128x1xf32> -> vector<128x1xf32>
      %c0_28 = arith.constant 0 : index
      %c0_29 = arith.constant 0 : index
      %45 = vector.load %arg14[%c0_28, %c0_29] : memref<128x32xf32, #tpu.memory_space<vmem>>, vector<128x32xf32>
      %46 = vector.broadcast %44 : vector<128x1xf32> to vector<128x32xf32>
      %47 = arith.mulf %45, %46 : vector<128x32xf32>
      %c0_30 = arith.constant 0 : index
      %48 = memref.load %arg3[%c0_30] : memref<1xf32, #tpu.memory_space<smem>>
      %49 = tpu.transpose %47, [1, 0] : vector<128x32xf32> -> vector<32x128xf32>
      %50 = vector.broadcast %48 : f32 to vector<32x128xf32>
      %51 = arith.mulf %50, %49 : vector<32x128xf32>
      %c0_31 = arith.constant 0 : index
      %c0_32 = arith.constant 0 : index
      %c0_33 = arith.constant 0 : index
      %52 = vector.load %arg4[%c0_31, %c0_32, %c0_33] : memref<1x32x128xf32, #tpu.memory_space<vmem>>, vector<1x32x128xf32>
      %53 = vector.shape_cast %52 : vector<1x32x128xf32> to vector<32x128xf32>
      %54 = arith.addf %51, %53 : vector<32x128xf32>
      %c0_34 = arith.constant 0 : index
      %c0_35 = arith.constant 0 : index
      %c0_36 = arith.constant 0 : index
      %55 = vector.load %arg10[%c0_34, %c0_35, %c0_36] : memref<1x32x128xf32, #tpu.memory_space<vmem>>, vector<1x32x128xf32>
      %56 = vector.shape_cast %55 : vector<1x32x128xf32> to vector<32x128xf32>
      %57 = vector.shape_cast %54 : vector<32x128xf32> to vector<1x32x128xf32>
      tpu.vector_store %arg10[%c0_34, %c0_35, %c0_36], %57 {strides = array<i32>} : memref<1x32x128xf32, #tpu.memory_space<vmem>>, vector<1x32x128xf32>,
    } else {
    }
    return
  }
  func.func @transform_0(%arg0: i32, %arg1: i32, %arg2: i32) -> i32 {
    %c0_i32 = arith.constant 0 : i32
    %c0_i32_0 = arith.constant 0 : i32
    return %c0_i32 : i32
  }
  func.func @transform_1(%arg0: i32, %arg1: i32, %arg2: i32) -> (i32, i32, i32) {
    %c0_i32 = arith.constant 0 : i32
    %c0_i32_0 = arith.constant 0 : i32
    return %arg0, %c0_i32, %arg1 : i32, i32, i32
  }
  func.func @transform_2(%arg0: i32, %arg1: i32, %arg2: i32) -> (i32, i32, i32) {
    %c0_i32 = arith.constant 0 : i32
    %c0_i32_0 = arith.constant 0 : i32
    return %arg0, %c0_i32, %arg2 : i32, i32, i32
  }
  func.func @transform_3(%arg0: i32, %arg1: i32, %arg2: i32) -> (i32, i32) {
    %c0_i32 = arith.constant 0 : i32
    %c0_i32_0 = arith.constant 0 : i32
    %c0_i32_1 = arith.constant 0 : i32
    return %c0_i32, %c0_i32_0 : i32, i32
  }
  func.func @transform_4(%arg0: i32, %arg1: i32, %arg2: i32) -> (i32, i32) {
    %c0_i32 = arith.constant 0 : i32
    %c0_i32_0 = arith.constant 0 : i32
    %c0_i32_1 = arith.constant 0 : i32
    return %c0_i32, %c0_i32_0 : i32, i32
  }
  func.func @transform_5(%arg0: i32, %arg1: i32, %arg2: i32) -> (i32, i32) {
    %c0_i32 = arith.constant 0 : i32
    %c0_i32_0 = arith.constant 0 : i32
    %c0_i32_1 = arith.constant 0 : i32
    return %c0_i32, %c0_i32_0 : i32, i32
  }
  func.func @transform_6(%arg0: i32, %arg1: i32, %arg2: i32) -> (i32, i32) {
    %c0_i32 = arith.constant 0 : i32
    %c0_i32_0 = arith.constant 0 : i32
    %c0_i32_1 = arith.constant 0 : i32
    return %c0_i32, %c0_i32_0 : i32, i32
  }
  func.func @transform_7(%arg0: i32, %arg1: i32, %arg2: i32) -> (i32, i32, i32) {
    %c0_i32 = arith.constant 0 : i32
    %c0_i32_0 = arith.constant 0 : i32
    return %arg0, %c0_i32, %arg1 : i32, i32, i32
  }
}

</mosaic_0001>

<bundles_post_ra>
// kernel: tpu_custom_call.1
= control target key start
LH: loop header
LB: loop body
LE: loop exit
PB: predicated region body
PF: predicated region fallthrough
CT: control target
= control target key end

     0   :  { %s2908_s0 = inlined_call_operand.<no memory space> [shape: f32[1], index: 0, kind: input, shape index: {}]   ;;  %s2909_s1 = inlined_call_operand.hbm [shape: f32[2,32,256], index: 1, kind: input, shape index: {}]   ;;  %s2910_s2 = inlined_call_operand.hbm [shape: f32[2,32,256], index: 2, kind: input, shape index: {}]   ;;  %s2911_s3 = inlined_call_operand.vmem [shape: bf16[8,32], index: 3, kind: input, shape index: {}]   ;;  %s2912_s4 = inlined_call_operand.vmem [shape: f32[8,1], index: 4, kind: input, shape index: {}]   ;;  %s2913_s5 = inlined_call_operand.vmem [shape: bf16[40,32], index: 5, kind: input, shape index: {}]   ;;  %s2914_s6 = inlined_call_operand.vmem [shape: f32[32,1], index: 6, kind: input, shape index: {}]   ;;  %s2915_s7 = inlined_call_operand.hbm [shape: f32[2,32,256], index: 7, kind: output, shape index: {}]  }
   0x1   :  { %2931 = sst [smem:[#allocation25_spill]] %s2909_s1 }
   0x2   :  { %2932 = sst [smem:[#allocation26_spill]] %s2911_s3 }
   0x3   :  { %2933 = sst [smem:[#allocation27_spill]] %s2912_s4 }
   0x4   :  { %2934 = sst [smem:[#allocation28_spill]] %s2913_s5 }
   0x5   :  { %2935 = sst [smem:[#allocation29_spill]] %s2914_s6 }
   0x6   :  { %2936 = sst [smem:[#allocation30_spill]] %s2915_s7 }
   0x7   :  { %12 = sst [smem:[#allocation6]] %s2908_s0 }
   0x8   :  { %13 = vsyncpa [#allocation8], 0 }
   0x9   :  { %15 = vsyncpa [#allocation8 + $0x1], 0 }
   0xa   :  { %16 = vsyncpa [#allocation11], 0 }
   0xb   :  { %18 = vsyncpa [#allocation11 + $0x1], 0 }
   0xc   :  { %19 = vsyncpa [#allocation9], 0 }
   0xd   :  { %21 = vsyncpa [#allocation9 + $0x1], 0  ;;  %s2210_s26 = smov 0   ;;  %s2212_s27 = smov 0  }
   0xe   :  { %s2214_s28 = smov 0   ;;  %s2216_s29 = smov 0  }
   0xf   :  { %s2218_s30 = smov 0   ;;  %s2220_s8 = smov 0  }
  0x10   :  { %s2222_s9 = smov 0   ;;  %s2224_s0 = smov 0  }
  0x11   :  { %s2226_s10 = smov 0   ;;  %s2228_s11 = smov 0  }
  0x12   :  { %s2230_s12 = smov 0   ;;  %s2232_s13 = smov 0  }
  0x13   :  { %s2234_s14 = smov 0  }
  0x14 LB: > { %2937 = sst [smem:[#allocation16_spill]] %s2118_s29  ;;  %s1628_s15 = sadd.s32 4294967295, %s2154_s14   ;;  %s2154_s14 = sphi %s2234_s14, %s27_s14   ;;  %s2150_s13 = sphi %s2232_s13, %s2987_s13   ;;  %s2146_s12 = sphi %s2230_s12, %s2978_s12   ;;  %s2142_s11 = sphi %s2228_s11, %s2977_s11   ;;  %s2138_s10 = sphi %s2226_s10, %s2986_s10   ;;  %s2134_s0 = sphi %s2224_s0, %s2976_s0   ;;  %s2130_s9 = sphi %s2222_s9, %s2975_s9   ;;  %s2126_s8 = sphi %s2220_s8, %s2985_s8   ;;  %s2122_s30 = sphi %s2218_s30, %s2984_s30   ;;  %s2118_s29 = sphi %s2216_s29, %s2983_s29   ;;  %s2114_s28 = sphi %s2214_s28, %s2982_s28   ;;  %s2110_s27 = sphi %s2212_s27, %s2981_s27   ;;  %s2106_s26 = sphi %s2210_s26, %s2980_s26  }
  0x15   : > { %2938 = sst [smem:[#allocation17_spill]] %s2134_s0  ;;  %s1629_s16 = sadd.s32 4294967294, %s2154_s14  }
  0x16   : > { %2939 = sst [smem:[#allocation18_spill]] %s2138_s10  ;;  %p83_p0 = scmp.ne.s32.totalorder %s2126_s8, %s2122_s30 }
  0x17   : > { %2940 = sst [smem:[#allocation19_spill]] %s2142_s11  ;;  %p84_p1 = scmp.eq.s32.totalorder %s2154_s14, 0 }
  0x18   : > { %2941 = sst [smem:[#allocation20_spill]] %s2146_s12  ;;  %p89_p2 = scmp.ne.s32.totalorder %s2122_s30, %s2118_s29 }
  0x19   : > { %p2284_p3 = scmp.eq.s32.totalorder %s1628_s15, 0  ;;  %p227_p4 = scmp.eq.s32.totalorder %s1628_s15, 7 }
  0x1a   : > { %p2290_p5 = por %p84_p1, %p83_p0  ;;  %p233_p6 = scmp.eq.s32.totalorder %s1629_s16, 7 }
  0x1b   : > { %p2296_p7 = por %p2284_p3, %p89_p2  ;;  %p2300_p8 = por %p227_p4, %p83_p0 }
  0x1c   : > { %p2304_p9 = por %p233_p6, %p89_p2  ;;  %p1732_p10 = scmp.lt.s32.totalorder %s2154_s14, 8 }
  0x1d   : > { %s2945_s22 = scalar_select %p2300_p8, 1, 0 }
  0x1e   : > { %s2947_s23 = scalar_select %p2304_p9, 1, 0 }
  0x1f   : > { %2946 = sst [smem:[#allocation21_spill]] %s2945_s22  ;;  %s268_s24 = sand.u32 1, %s2126_s8  }
  0x20   : > { %2948 = sst [smem:[#allocation22_spill]] %s2947_s23  ;;  %s1632_s25 = sshll.u32 %s268_s24, 5 }
  0x21   : > { %s2921_s15 = sshll.u32 %s2150_s13, 3  ;;  %s272_s18 = scalar_lea.vmem [#allocation7], %s1632_s25 }
  0x22   : > { %s276_s16 = sadd.s32 %s2146_s12, %s2921_s15  ;;  %s281_s17 = sshll.u32 %s272_s18, 4  ;;  %s282_s17 = int_to_ptr.vmem [resolvable:$true] %s281_s17 }
  0x23   : > { %s1634_s29 = sshll.u32 %s276_s16, 3  ;;  %s2949_s1 = sld [smem:[#allocation25_spill]] }
  0x24   : > { %p1722_p11 = pnand %p1732_p10, %p2290_p5  ;;  %s269_s25 = scalar_lea.sflag [#allocation8], %s268_s24 }
  0x25   : > { %s2922_s18 = smov 256   ;;  %s2923_s16 = smov 128  }
  0x26   : > { %s2924_s15 = smov 8   ;;  %p1638_p12 = scmp.ge.s32.totalorder %s2154_s14, 1 }
  0x27   : > { %p312_p13 = scmp.lt.s32.totalorder %s2154_s14, 9  ;;  %p117_p4 = scmp.ne.s32.totalorder %s2110_s27, %s2106_s26 }
  0x28   : > { %p111_p5 = scmp.ne.s32.totalorder %s2114_s28, %s2110_s27  ;;  %s291_s24 = sand.u32 1, %s2114_s28  }
  0x29   : > { %s278_s0 = scalar_lea.hbm %s2949_s1, %s1634_s29  ;;  %p2327_p0 = pnand %p1638_p12, %p312_p13 }
  0x2a   : > { %s279_s23 = sshll.u32 %s278_s0, 4  ;;  %s39_s0 = sadd.s32 1, %s2142_s11  ;;  %s280_s23 = int_to_ptr.hbm [resolvable:$true] %s279_s23 }
  0x2b   : > { %1724 = dma.hbm_to_vmem [thread:$0]  (!%p1722_p11), %s280_s23, 512, %s282_s17, %s269_s25, %s2922_s18, %s2923_s16, %s2924_s15  }
  0x2c   : > { %p40_p2 = scmp.ge.s32.totalorder %s39_s0, 2  ;;  %s2952_s17 = sadd.s32 1, %s2146_s12 }
  0x2d   : > { %p2346_p11 = por %p117_p4, %p2284_p3  ;;  %s2954_s25 = sshll.u32 %s2150_s13, 3 }
  0x2e   : > { %s2989_s0 = smov (%p40_p2, %s39_s0), 0  ;;  %s2991_s17 = smov (!%p40_p2, %s2952_s17), %s2146_s12 }
  0x2f   : > { %2951 = sst [smem:[#allocation23_spill]] %s2989_s0  ;;  %s100_s22 = ssub.s32 %s2142_s11, %s2989_s0 }
  0x30   : > { %p44_p6 = scmp.ge.s32.totalorder %s2991_s17, 2  ;;  %s299_s18 = sadd.s32 %s2142_s11, %s2954_s25 }
  0x31   : > { %s2956_s26 = sadd.s32 1, %s2150_s13  ;;  %p2363_p12 = por %p111_p5, %p84_p1 }
  0x32   : > { %s2993_s17 = smov (%p44_p6, %s2991_s17), 0  ;;  %s2995_s26 = smov (!%p44_p6, %s2956_s26), %s2150_s13 }
  0x33   : > { %2955 = sst [smem:[#allocation24_spill]] %s2993_s17  ;;  %s72_s16 = ssub.s32 %s2146_s12, %s2993_s17 }
  0x34   : > { %p48_p3 = scmp.ge.s32.totalorder %s2995_s26, 2  ;;  %s1635_s19 = sshll.u32 %s291_s24, 5 }
  0x35   : > { %s1637_s25 = sshll.u32 %s299_s18, 3  ;;  %s295_s10 = scalar_lea.vmem [#allocation10], %s1635_s19 }
  0x36   : > { %s2997_s26 = smov (%p48_p3, %s2995_s26), 0  ;;  %s301_s1 = scalar_lea.hbm %s2910_s2, %s1637_s25 }
  0x37   : > { %s71_s17 = ssub.s32 %s2150_s13, %s2997_s26  ;;  %s302_s0 = sshll.u32 %s301_s1, 4  ;;  %s303_s0 = int_to_ptr.hbm [resolvable:$true] %s302_s0 }
  0x38   : > { %s73_s12 = sor.u32 %s72_s16, %s71_s17  ;;  %s101_s11 = sor.u32 %s100_s22, %s71_s17 }
  0x39   : > { %p74_p1 = scmp.eq.s32.totalorder %s73_s12, 0  ;;  %p102_p13 = scmp.eq.s32.totalorder %s101_s11, 0 }
  0x3a   : > { %s304_s5 = sshll.u32 %s295_s10, 4  ;;  %s2958_s6 = sadd.s32 1, %s2126_s8  ;;  %s305_s5 = int_to_ptr.vmem [resolvable:$true] %s304_s5 }
  0x3b   : > { %s2377_s3 = scalar_select %p74_p1, %s2126_s8, %s2958_s6  }
  0x3c   : > { %s2959_s18 = sadd.s32 1, %s2114_s28  ;;  %p1725_p2 = pnand %p1732_p10, %p2363_p12 }
  0x3d   : > { %s2382_s4 = scalar_select %p102_p13, %s2114_s28, %s2959_s18  }
  0x3e   : > { %s292_s7 = scalar_lea.sflag [#allocation11], %s291_s24  ;;  %s2960_s20 = smov 8  }
  0x3f   : > { %s2961_s1 = smov 128   ;;  %s2962_s16 = smov 256  }
  0x40   : > { %1727 = dma.hbm_to_vmem [thread:$0]  (!%p1725_p2), %s303_s0, 512, %s305_s5, %s292_s7, %s2962_s16, %s2961_s1, %s2960_s20  }
  0x41   : > { %316 = sbr.rel (%p2327_p0) target bundleno = 1606 (0x646), region = 48  ;;  %s2394_s10 = sand.u32 (!%p2327_p0), 1, %s2122_s30  }
  0x42   : > { %s1639_s6 = sshll.u32 (!%p2327_p0), %s2394_s10, 5  ;;  %s319_s11 = scalar_lea.sflag (!%p2327_p0), [#allocation8], %s2394_s10 }
  0x43   : > { %s2398_s12 = scalar_lea.vmem (!%p2327_p0), [#allocation7], %s1639_s6 }
  0x46   : > { %2093 = dma.done.wait (%p2296_p7), %s319_s11, 512  }
  0x47   : > { %2095 = vsyncadd (%p2296_p7), %s319_s11, 4294966784  ;;  %s328_s5 = sand.u32 1, %s2110_s27  }
  0x48   : > { %s1640_s15 = sshll.u32 %s328_s5, 5  ;;  %s329_s29 = scalar_lea.sflag [#allocation11], %s328_s5 }
  0x49   : > { %s2405_s0 = scalar_lea.vmem [#allocation10], %s1640_s15 }
  0x4a   : > { %2097 = dma.done.wait (%p2346_p11), %s329_s29, 512  }
  0x4b   : > { %2099 = vsyncadd (%p2346_p11), %s329_s29, 4294966784  ;;  %s2411_s17 = scalar_lea.vmem [#allocation12], %s1639_s6  ;;  %p1642_p10 = scmp.ne.s32.totalorder %s2130_s9, 0 }
  0x4c   : > { %s2963_s23 = sld [smem:[#allocation27_spill]] (!%p1642_p10) }
  0x4d   : > { %373 = sbr.rel (%p1642_p10) target bundleno = 508 (0x1fc), region = 60  ;;  %s2964_s25 = sld [smem:[#allocation26_spill]] (!%p1642_p10) }
  0x52   : > { %v376_v0 = vld [vmem:[%s2398_s12 + $0x10] sm:$0xff]  ;;  %v377_v1 = vld [vmem:[%s2398_s12 + $0x18] sm:$0xff]  ;;  %v374_v2 = vld [vmem:[%s2398_s12] sm:$0xff]  ;;  %vm469_vm0 = vcmask 7168   ;;  %v2159_v5 = vmov 0.0   ;;  %v2160_v6 = vmov -inf  }
  0x53   : > { %v379_v3 = vpack.c.bf16 %v377_v1, %v376_v0  ;;  %v375_v4 = vld [vmem:[%s2398_s12 + $0x8] sm:$0xff]  ;;  %486 = vst.msk [vmem:[#allocation4] sm:$0xff] %vm469_vm0, %v2159_v5  ;;  %v2161_v7 = vmov 0   ;;  %v381_v8 = vld [vmem:[%s2963_s23] sm:$0xff]  ;;  %vm387_vm1 = vcmask 261120   ;;  %vm452_vm2 = vcmask 60416  }
  0x54   : > { %470 = vst.msk [vmem:[#allocation3] sm:$0xff] %vm469_vm0, %v2160_v6  ;;  %1849 = vset.pattern.permute.xlu0 %v2161_v7  ;;  %v378_v9 = vpack.c.bf16 %v375_v4, %v374_v2  ;;  %v380_v10 = vld [vmem:[%s2964_s25] sm:$0xf] }
  0x55   : > { %397 = vmatpush.bf16.msra.mxu0 %v379_v3  ;;  %471 = vst.msk [vmem:[#allocation3 + $0x8] sm:$0xff] %vm469_vm0, %v2160_v6  ;;  %384 = vperm.xlu0 %1849, %v381_v8  }
  0x56   : > { %472 = vst.msk [vmem:[#allocation3 + $0x10] sm:$0xff] %vm469_vm0, %v2160_v6 }
  0x57   : > { %473 = vst.msk [vmem:[#allocation3 + $0x18] sm:$0xff] %vm469_vm0, %v2160_v6 }
  0x58   : > { %474 = vst.msk [vmem:[#allocation3 + $0x20] sm:$0xff] %vm469_vm0, %v2160_v6 }
  0x59   : > { %398 = vmatpush.bf16.msra.mxu0 %v378_v9  ;;  %475 = vst.msk [vmem:[#allocation3 + $0x28] sm:$0xff] %vm469_vm0, %v2160_v6 }
  0x5a   : > { %476 = vst.msk [vmem:[#allocation3 + $0x30] sm:$0xff] %vm469_vm0, %v2160_v6 }
  0x5b   : > { %477 = vst.msk [vmem:[#allocation3 + $0x38] sm:$0xff] %vm469_vm0, %v2160_v6 }
  0x5c   : > { %1643 = vmatmul.msk.bf16.vlgmr.msra.gmra.mxu0 %vm387_vm1, %v380_v10  ;;  %478 = vst.msk [vmem:[#allocation3 + $0x40] sm:$0xff] %vm469_vm0, %v2160_v6 }
  0x5d   : > { %479 = vst.msk [vmem:[#allocation3 + $0x48] sm:$0xff] %vm469_vm0, %v2160_v6 }
  0x5e   : > { %480 = vst.msk [vmem:[#allocation3 + $0x50] sm:$0xff] %vm469_vm0, %v2160_v6 }
  0x5f   : > { %481 = vst.msk [vmem:[#allocation3 + $0x58] sm:$0xff] %vm469_vm0, %v2160_v6 }
  0x60   : > { %482 = vst.msk [vmem:[#allocation3 + $0x60] sm:$0xff] %vm469_vm0, %v2160_v6 }
  0x61   : > { %483 = vst.msk [vmem:[#allocation3 + $0x68] sm:$0xff] %vm469_vm0, %v2160_v6 }
  0x62   : > { %484 = vst.msk [vmem:[#allocation3 + $0x70] sm:$0xff] %vm469_vm0, %v2160_v6 }
  0x63   : > { %485 = vst.msk [vmem:[#allocation3 + $0x78] sm:$0xff] %vm469_vm0, %v2160_v6 }
  0x64   : > { %487 = vst.msk [vmem:[#allocation4 + $0x8] sm:$0xff] %vm469_vm0, %v2159_v5 }
  0x65   : > { %488 = vst.msk [vmem:[#allocation4 + $0x10] sm:$0xff] %vm469_vm0, %v2159_v5 }
  0x66   : > { %489 = vst.msk [vmem:[#allocation4 + $0x18] sm:$0xff] %vm469_vm0, %v2159_v5 }
  0x67   : > { %490 = vst.msk [vmem:[#allocation4 + $0x20] sm:$0xff] %vm469_vm0, %v2159_v5 }
  0x68   : > { %491 = vst.msk [vmem:[#allocation4 + $0x28] sm:$0xff] %vm469_vm0, %v2159_v5 }
  0x69   : > { %492 = vst.msk [vmem:[#allocation4 + $0x30] sm:$0xff] %vm469_vm0, %v2159_v5 }
  0x6a   : > { %493 = vst.msk [vmem:[#allocation4 + $0x38] sm:$0xff] %vm469_vm0, %v2159_v5 }
  0x6b   : > { %494 = vst.msk [vmem:[#allocation4 + $0x40] sm:$0xff] %vm469_vm0, %v2159_v5 }
  0x6c   : > { %495 = vst.msk [vmem:[#allocation4 + $0x48] sm:$0xff] %vm469_vm0, %v2159_v5 }
  0x6d   : > { %496 = vst.msk [vmem:[#allocation4 + $0x50] sm:$0xff] %vm469_vm0, %v2159_v5 }
  0x6e   : > { %497 = vst.msk [vmem:[#allocation4 + $0x58] sm:$0xff] %vm469_vm0, %v2159_v5 }
  0x6f   : > { %498 = vst.msk [vmem:[#allocation4 + $0x60] sm:$0xff] %vm469_vm0, %v2159_v5 }
  0x70   : > { %499 = vst.msk [vmem:[#allocation4 + $0x68] sm:$0xff] %vm469_vm0, %v2159_v5 }
  0x71   : > { %500 = vst.msk [vmem:[#allocation4 + $0x70] sm:$0xff] %vm469_vm0, %v2159_v5 }
  0x72   : > { %501 = vst.msk [vmem:[#allocation4 + $0x78] sm:$0xff] %vm469_vm0, %v2159_v5 }
  0x73   : > { %502 = vst.msk [vmem:[#allocation5] sm:$0xff] %vm387_vm1, %v2159_v5 }
  0x74   : > { %503 = vst.msk [vmem:[#allocation5 + $0x8] sm:$0xff] %vm387_vm1, %v2159_v5 }
  0x75   : > { %504 = vst.msk [vmem:[#allocation5 + $0x10] sm:$0xff] %vm387_vm1, %v2159_v5 }
  0x76   : > { %505 = vst.msk [vmem:[#allocation5 + $0x18] sm:$0xff] %vm387_vm1, %v2159_v5 }
  0x77   : > { %506 = vst.msk [vmem:[#allocation5 + $0x20] sm:$0xff] %vm387_vm1, %v2159_v5 }
  0x78   : > { %507 = vst.msk [vmem:[#allocation5 + $0x28] sm:$0xff] %vm387_vm1, %v2159_v5 }
  0x79   : > { %508 = vst.msk [vmem:[#allocation5 + $0x30] sm:$0xff] %vm387_vm1, %v2159_v5 }
  0x7a   : > { %509 = vst.msk [vmem:[#allocation5 + $0x38] sm:$0xff] %vm387_vm1, %v2159_v5 }
  0x7b   : > { %510 = vst.msk [vmem:[#allocation5 + $0x40] sm:$0xff] %vm387_vm1, %v2159_v5 }
  0x7c   : > { %511 = vst.msk [vmem:[#allocation5 + $0x48] sm:$0xff] %vm387_vm1, %v2159_v5 }
  0x7d   : > { %512 = vst.msk [vmem:[#allocation5 + $0x50] sm:$0xff] %vm387_vm1, %v2159_v5 }
  0x7e   : > { %513 = vst.msk [vmem:[#allocation5 + $0x58] sm:$0xff] %vm387_vm1, %v2159_v5 }
  0x7f   : > { %514 = vst.msk [vmem:[#allocation5 + $0x60] sm:$0xff] %vm387_vm1, %v2159_v5 }
  0x80   : > { %515 = vst.msk [vmem:[#allocation5 + $0x68] sm:$0xff] %vm387_vm1, %v2159_v5 }
  0x81   : > { %516 = vst.msk [vmem:[#allocation5 + $0x70] sm:$0xff] %vm387_vm1, %v2159_v5 }
  0x82   : > { %517 = vst.msk [vmem:[#allocation5 + $0x78] sm:$0xff] %vm387_vm1, %v2159_v5 }
  0xc7   : > { %v385_v11 = vpop.permute.xlu0 %384 }
  0xd9   : > { %v400_v12 = vpop.f32.mrf.mxu0 }
  0xda   : > { %v401_v13 = vadd.f32 %v400_v12, %v385_v11 }
  0xdc   : > { %404 = vxpose.xlu0.b32.start.end [1/1] (short) %v401_v13, 128 }
  0xe1   : > { %v402_v14 = vpop.f32.mrf.mxu0 }
 0x180   : > { %v420_v15 = vpop.trf.xlu0 }
 0x181   : > { %v436_v16 = vpack.c.bf16 %v420_v15, %v420_v15 }
 0x183   : > { %453 = vst.msk [vmem:[#allocation2] sm:$0xf] %vm452_vm2, %v436_v16 }
 0x188   : > { %v421_v17 = vpop.trf.xlu0 }
 0x189   : > { %v437_v18 = vpack.c.bf16 %v421_v17, %v421_v17 }
 0x18b   : > { %454 = vst.msk [vmem:[#allocation2 + $0x4] sm:$0xf] %vm452_vm2, %v437_v18 }
 0x190   : > { %v422_v19 = vpop.trf.xlu0 }
 0x191   : > { %v438_v20 = vpack.c.bf16 %v422_v19, %v422_v19 }
 0x193   : > { %455 = vst.msk [vmem:[#allocation2 + $0x8] sm:$0xf] %vm452_vm2, %v438_v20 }
 0x198   : > { %v423_v21 = vpop.trf.xlu0 }
 0x199   : > { %v439_v22 = vpack.c.bf16 %v423_v21, %v423_v21 }
 0x19b   : > { %456 = vst.msk [vmem:[#allocation2 + $0xc] sm:$0xf] %vm452_vm2, %v439_v22 }
 0x1a0   : > { %v424_v23 = vpop.trf.xlu0 }
 0x1a1   : > { %v440_v24 = vpack.c.bf16 %v424_v23, %v424_v23 }
 0x1a3   : > { %457 = vst.msk [vmem:[#allocation2 + $0x10] sm:$0xf] %vm452_vm2, %v440_v24 }
 0x1a8   : > { %v425_v25 = vpop.trf.xlu0 }
 0x1a9   : > { %v441_v26 = vpack.c.bf16 %v425_v25, %v425_v25 }
 0x1ab   : > { %458 = vst.msk [vmem:[#allocation2 + $0x14] sm:$0xf] %vm452_vm2, %v441_v26 }
 0x1b0   : > { %v426_v27 = vpop.trf.xlu0 }
 0x1b1   : > { %v442_v28 = vpack.c.bf16 %v426_v27, %v426_v27 }
 0x1b3   : > { %459 = vst.msk [vmem:[#allocation2 + $0x18] sm:$0xf] %vm452_vm2, %v442_v28 }
 0x1b8   : > { %v427_v29 = vpop.trf.xlu0 }
 0x1b9   : > { %v443_v30 = vpack.c.bf16 %v427_v29, %v427_v29 }
 0x1bb   : > { %460 = vst.msk [vmem:[#allocation2 + $0x1c] sm:$0xf] %vm452_vm2, %v443_v30 }
 0x1c0   : > { %v428_v31 = vpop.trf.xlu0 }
 0x1c1   : > { %v444_v32 = vpack.c.bf16 %v428_v31, %v428_v31 }
 0x1c3   : > { %461 = vst.msk [vmem:[#allocation2 + $0x20] sm:$0xf] %vm452_vm2, %v444_v32 }
 0x1c8   : > { %v429_v33 = vpop.trf.xlu0 }
 0x1c9   : > { %v445_v34 = vpack.c.bf16 %v429_v33, %v429_v33 }
 0x1cb   : > { %462 = vst.msk [vmem:[#allocation2 + $0x24] sm:$0xf] %vm452_vm2, %v445_v34 }
 0x1d0   : > { %v430_v35 = vpop.trf.xlu0 }
 0x1d1   : > { %v446_v36 = vpack.c.bf16 %v430_v35, %v430_v35 }
 0x1d3   : > { %463 = vst.msk [vmem:[#allocation2 + $0x28] sm:$0xf] %vm452_vm2, %v446_v36 }
 0x1d8   : > { %v431_v37 = vpop.trf.xlu0 }
 0x1d9   : > { %v447_v38 = vpack.c.bf16 %v431_v37, %v431_v37 }
 0x1db   : > { %464 = vst.msk [vmem:[#allocation2 + $0x2c] sm:$0xf] %vm452_vm2, %v447_v38 }
 0x1e0   : > { %v432_v39 = vpop.trf.xlu0 }
 0x1e1   : > { %v448_v40 = vpack.c.bf16 %v432_v39, %v432_v39 }
 0x1e3   : > { %465 = vst.msk [vmem:[#allocation2 + $0x30] sm:$0xf] %vm452_vm2, %v448_v40 }
 0x1e8   : > { %v433_v41 = vpop.trf.xlu0 }
 0x1e9   : > { %v449_v42 = vpack.c.bf16 %v433_v41, %v433_v41 }
 0x1eb   : > { %466 = vst.msk [vmem:[#allocation2 + $0x34] sm:$0xf] %vm452_vm2, %v449_v42 }
 0x1f0   : > { %v434_v43 = vpop.trf.xlu0 }
 0x1f1   : > { %v450_v44 = vpack.c.bf16 %v434_v43, %v434_v43 }
 0x1f3   : > { %467 = vst.msk [vmem:[#allocation2 + $0x38] sm:$0xf] %vm452_vm2, %v450_v44 }
 0x1f8   : > { %v435_v45 = vpop.trf.xlu0 }
 0x1f9   : > { %v451_v46 = vpack.c.bf16 %v435_v45, %v435_v45 }
 0x1fb   : > { %468 = vst.msk [vmem:[#allocation2 + $0x3c] sm:$0xf] %vm452_vm2, %v451_v46 }
 0x1fc PF: > { %v520_v47 = vld [vmem:[%s2405_s0 + $0x10] sm:$0xff]  ;;  %v521_v48 = vld [vmem:[%s2405_s0 + $0x18] sm:$0xff]  ;;  %v518_v49 = vld [vmem:[%s2405_s0] sm:$0xff]  ;;  %v2162_v52 = vmov 0   ;;  %s2965_s20 = sld [smem:[#allocation29_spill]]  ;;  %vm542_vm3 = vcmask 261120  }
 0x1fd   : > { %v523_v50 = vpack.c.bf16 %v521_v48, %v520_v47  ;;  %v519_v51 = vld [vmem:[%s2405_s0 + $0x8] sm:$0xff]  ;;  %1850 = vset.pattern.permute.xlu0 %v2162_v52  ;;  %1851 = vset.pattern.permute.xlu1 %v2162_v52  ;;  %s2966_s6 = sld [smem:[#allocation28_spill]]  ;;  %vm687_vm4 = vcmask 1043456   ;;  %v1703_v2 = vld [vmem:[#allocation2] sm:$0xff]  ;;  %v1705_v3 = vld [vmem:[#allocation2 + $0x10] sm:$0xff]  ;;  %vm662_vm5 = vcmask 64512  }
 0x1fe   : > { %1852 = vset.pattern.permute.xlu2 %v2162_v52  ;;  %v522_v54 = vpack.c.bf16 %v519_v51, %v518_v49  ;;  %v1704_v7 = vld [vmem:[#allocation2 + $0x8] sm:$0xff]  ;;  %v1706_v8 = vld [vmem:[#allocation2 + $0x18] sm:$0xff]  ;;  %v1707_v17 = vld [vmem:[#allocation2 + $0x20] sm:$0xff]  ;;  %vm1060_vm6 = vcmask 7168   ;;  %p1695_p7 = scmp.ne.s32.totalorder %s2130_s9, 1 }
 0x1ff   : > { %558 = vmatpush.bf16.msra.mxu0 %v523_v50  ;;  %v1708_v23 = vld [vmem:[#allocation2 + $0x28] sm:$0xff]  ;;  %v1709_v24 = vld [vmem:[#allocation2 + $0x30] sm:$0xff]  ;;  %v2573_v41 = vld [vmem:[#allocation3] sm:$0xff]  ;;  %s1442_s9 = sld [smem:[#allocation6]] (!%p1695_p7) }
 0x200   : > { %v2583_v45 = vld [vmem:[#allocation3 + $0x70] sm:$0xff]  ;;  %v2585_v46 = vld [vmem:[#allocation3 + $0x20] sm:$0xff]  ;;  %v741_v52 = vld [vmem:[#allocation3 + $0x8] sm:$0xff] }
 0x202   : > { %v576_v53 = vld [vmem:[%s2965_s20] sm:$0xff]  ;;  %v577_v56 = vld [vmem:[%s2965_s20 + $0x8] sm:$0xff]  ;;  %v578_v57 = vld [vmem:[%s2965_s20 + $0x10] sm:$0xff] }
 0x203   : > { %582 = vperm.xlu0 %1850, %v576_v53   ;;  %v1701_v55 = vld [vmem:[%s2966_s6] sm:$0xff]  ;;  %559 = vmatpush.bf16.msra.mxu0 %v522_v54  ;;  %v579_v58 = vld [vmem:[%s2965_s20 + $0x18] sm:$0xff]  ;;  %v1702_v59 = vld [vmem:[%s2966_s6 + $0x8] sm:$0xff] }
 0x204   : > { %592 = vperm.xlu1 %1851, %v578_v57   ;;  %v528_v60 = vld [vmem:[%s2966_s6 + $0x10] sm:$0xf]  ;;  %v1710_v4 = vld [vmem:[#allocation2 + $0x38] sm:$0xff] }
 0x205   : > { %v538_v61 = vunpack.c.l.b16 %v528_v60  ;;  %v2599_v53 = vld [vmem:[#allocation3 + $0x10] sm:$0xff] }
 0x206   : > { %1652 = vmatmul.msk.bf16.vlgmr.msra.gmra.mxu0 %vm542_vm3, %v1701_v55 }
 0x207   : > { %v541_v62 = vpack.c.b16 %v538_v61, %v538_v61 }
 0x20b   : > { %587 = vperm.xlu0 %1850, %v577_v56  }
 0x20c   : > { %597 = vperm.xlu1 %1851, %v579_v58   ;;  %v2608_v58 = vld [vmem:[#allocation3 + $0x28] sm:$0xff] }
 0x216   : > { %1653 = vmatmul.msk.bf16.gmra.mxu0 %vm542_vm3, %v1702_v59  ;;  %v2610_v59 = vld [vmem:[#allocation3 + $0x18] sm:$0xff] }
 0x226   : > { %1654 = vmatmul.msk.bf16.gmra.mxu0 %vm542_vm3, %v541_v62 }
 0x275   : > { %v583_v11 = vpop.permute.xlu0 %582 }
 0x276   : > { %v593_v9 = vpop.permute.xlu1 %592 }
 0x27d   : > { %v588_v18 = vpop.permute.xlu0 %587 }
 0x27e   : > { %v598_v12 = vpop.permute.xlu1 %597 }
 0x283   : > { %v561_v63 = vpop.f32.mrf.mxu0 }
 0x284   : > { %v575_v0 = vpack.c.bf16 %v561_v63, %v561_v63 }
 0x286   : > { %v689_v1 = vsel %vm687_vm4, %v575_v0, 0 }
 0x287   : > { %698 = vmatpush.bf16.msrb.mxu0 %v689_v1  ;;  %1711 = vmatpush.bf16.msra.mxu1 %v689_v1 }
 0x288   : > { %1712 = vmatpush.bf16.msra.mxu3 %v689_v1  ;;  %v2626_v1 = vld [vmem:[#allocation3 + $0x78] sm:$0xff] }
 0x28a   : > { %1687 = vmatmul.msk.bf16.vlgmr.msrb.gmra.mxu0 %vm662_vm5, %v1703_v2  ;;  %1689 = vmatmul.msk.bf16.vlgmr.msra.gmra.mxu1 %vm662_vm5, %v1705_v3 }
 0x28b   : > { %v563_v5 = vpop.f32.mrf.mxu0  ;;  %1694 = vmatmul.msk.bf16.vlgmr.msra.gmra.mxu3 %vm662_vm5, %v1710_v4 }
 0x28c   : > { %v600_v21 = vadd.f32 %v583_v11, %v563_v5  ;;  %v746_v5 = vld [vmem:[#allocation3 + $0x30] sm:$0xff] }
 0x293   : > { %v566_v6 = vpop.f32.mrf.mxu0 }
 0x294   : > { %v601_v19 = vadd.f32 %v588_v18, %v566_v6 }
 0x296   : > { %v604_v22 = vpack.c.bf16 %v601_v19, %v600_v21 }
 0x29a   : > { %1688 = vmatmul.msk.bf16.gmra.mxu0 %vm662_vm5, %v1704_v7  ;;  %1690 = vmatmul.msk.bf16.gmra.mxu1 %vm662_vm5, %v1706_v8  ;;  %v747_v8 = vld [vmem:[#allocation3 + $0x38] sm:$0xff] }
 0x29b   : > { %v568_v10 = vpop.f32.mrf.mxu0 }
 0x29c   : > { %v602_v13 = vadd.f32 %v593_v9, %v568_v10  ;;  %v2637_v9 = vld [vmem:[#allocation3 + $0x50] sm:$0xff] }
 0x2a3   : > { %v571_v14 = vpop.f32.mrf.mxu0 }
 0x2a4   : > { %v603_v15 = vadd.f32 %v598_v12, %v571_v14  ;;  %v2646_v14 = vld [vmem:[#allocation3 + $0x40] sm:$0xff] }
 0x2a6   : > { %v605_v16 = vpack.c.bf16 %v603_v15, %v602_v13  ;;  %v2648_v15 = vld [vmem:[#allocation3 + $0x58] sm:$0xff] }
 0x2a8   : > { %1091 = vmatpush.bf16.xpose.msra.mxu2 %v605_v16  ;;  %1713 = vmatpush.bf16.xpose.msrb.mxu3 %v605_v16 }
 0x2aa   : > { %1691 = vmatmul.msk.bf16.gmra.mxu1 %vm662_vm5, %v1707_v17 }
 0x2ab   : > { %v573_v20 = vpop.f32.mrf.mxu0 }
 0x2ac   : > { %v749_v20 = vld [vmem:[#allocation3 + $0x48] sm:$0xff] }
 0x2b0   : > { %1092 = vmatpush.bf16.xpose.msra.mxu2 %v604_v22  ;;  %1714 = vmatpush.bf16.xpose.msrb.mxu3 %v604_v22 }
 0x2ba   : > { %1692 = vmatmul.msk.bf16.gmra.mxu1 %vm662_vm5, %v1708_v23 }
 0x2ca   : > { %1693 = vmatmul.msk.bf16.gmra.mxu1 %vm662_vm5, %v1709_v24  ;;  %v752_v24 = vld [vmem:[#allocation3 + $0x60] sm:$0xff] }
 0x307   : > { %v2525_v25 = vpop.f32.mrf.mxu0  ;;  %v2527_v26 = vpop.f32.mrf.mxu1 }
 0x308   : > { %756 = vmax.xlane.f32.xlu2 %v2525_v25 }
 0x30e   : > { %v2530_v27 = vpop.f32.mrf.mxu3 }
 0x30f   : > { %v2532_v28 = vpop.f32.mrf.mxu0  ;;  %v2534_v29 = vpop.f32.mrf.mxu1  ;;  %784 = vmax.xlane.f32.xlu1 %v2530_v27 }
 0x310   : > { %764 = vmax.xlane.f32.xlu2 %v2527_v26 }
 0x316   : > { %v2550_v34 = vpop.f32.mrf.mxu3 }
 0x317   : > { %v2538_v30 = vpop.f32.mrf.mxu0  ;;  %v2540_v31 = vpop.f32.mrf.mxu1 }
 0x318   : > { %758 = vmax.xlane.f32.xlu2 %v2532_v28  ;;  %760 = vmax.xlane.f32.xlu0 %v2538_v30 }
 0x31f   : > { %v2544_v32 = vpop.f32.mrf.mxu0  ;;  %v2546_v33 = vpop.f32.mrf.mxu1 }
 0x320   : > { %766 = vmax.xlane.f32.xlu2 %v2534_v29  ;;  %762 = vmax.xlane.f32.xlu1 %v2544_v32 }
 0x327   : > { %v2552_v35 = vpop.f32.mrf.mxu1 }
 0x328   : > { %786 = vmax.xlane.f32.xlu2 %v2550_v34 }
 0x32f   : > { %v2555_v36 = vpop.f32.mrf.mxu1 }
 0x330   : > { %768 = vmax.xlane.f32.xlu2 %v2540_v31 }
 0x337   : > { %v2558_v37 = vpop.f32.mrf.mxu1 }
 0x338   : > { %770 = vmax.xlane.f32.xlu2 %v2546_v33  ;;  %776 = vmax.xlane.f32.xlu0 %v2558_v37 }
 0x33f   : > { %v2562_v38 = vpop.f32.mrf.mxu1 }
 0x340   : > { %772 = vmax.xlane.f32.xlu2 %v2552_v35  ;;  %778 = vmax.xlane.f32.xlu1 %v2562_v38 }
 0x347   : > { %v2566_v39 = vpop.f32.mrf.mxu1 }
 0x348   : > { %774 = vmax.xlane.f32.xlu2 %v2555_v36 }
 0x34f   : > { %v2569_v40 = vpop.f32.mrf.mxu1 }
 0x350   : > { %780 = vmax.xlane.f32.xlu2 %v2566_v39  ;;  %782 = vmax.xlane.f32.xlu0 %v2569_v40 }
 0x37b   : > { %v757_v42 = vpop.xlane.xlu2 %756 }
 0x37c   : > { %v2576_v43 = vmax.f32 %v2573_v41, %v757_v42  ;;  %v2663_v42 = vld [vmem:[#allocation3 + $0x68] sm:$0xff] }
 0x37e   : > { %v804_v44 = vsub.f32 %v2573_v41, %v2576_v43  ;;  %1278 = vst.msk [vmem:[#allocation3] sm:$0xff] %vm1060_vm6, %v2576_v43  ;;  %854 = vperm.xlu0 %1850, %v2576_v43  }
 0x382   : > { %v785_v47 = vpop.xlane.xlu1 %784 }
 0x383   : > { %v765_v48 = vpop.xlane.xlu2 %764  ;;  %v2588_v49 = vmax.f32 %v2583_v45, %v785_v47 }
 0x384   : > { %v2591_v50 = vmax.f32 %v2585_v46, %v765_v48 }
 0x385   : > { %1292 = vst.msk [vmem:[#allocation3 + $0x70] sm:$0xff] %vm1060_vm6, %v2588_v49 }
 0x386   : > { %v808_v51 = vsub.f32 %v2585_v46, %v2591_v50  ;;  %1282 = vst.msk [vmem:[#allocation3 + $0x20] sm:$0xff] %vm1060_vm6, %v2591_v50 }
 0x38b   : > { %v759_v54 = vpop.xlane.xlu2 %758  ;;  %v761_v55 = vpop.xlane.xlu0 %760 }
 0x38c   : > { %v789_v56 = vmax.f32 %v741_v52, %v759_v54  ;;  %v2602_v57 = vmax.f32 %v2599_v53, %v761_v55 }
 0x38e   : > { %1279 = vst.msk [vmem:[#allocation3 + $0x8] sm:$0xff] %vm1060_vm6, %v789_v56  ;;  %864 = vperm.xlu2 %1852, %v2602_v57   ;;  %859 = vperm.xlu1 %1851, %v789_v56   ;;  %v805_v23 = vsub.f32 %v741_v52, %v789_v56  ;;  %v806_v52 = vsub.f32 %v2599_v53, %v2602_v57  ;;  %v820_v56 = vmul.f32 1.442695, %v804_v44 }
 0x38f   : > { %1280 = vst.msk [vmem:[#allocation3 + $0x10] sm:$0xff] %vm1060_vm6, %v2602_v57 }
 0x390   : > { %v822_v47 = vmul.f32 1.442695, %v805_v23 }
 0x392   : > { %1853 = vpow2.f32 %v822_v47 }
 0x393   : > { %v767_v60 = vpop.xlane.xlu2 %766  ;;  %v763_v61 = vpop.xlane.xlu1 %762  ;;  %1855 = vpow2.f32 %v820_v56 }
 0x394   : > { %v2613_v62 = vmax.f32 %v2608_v58, %v767_v60  ;;  %v2616_v63 = vmax.f32 %v2610_v59, %v763_v61 }
 0x396   : > { %v809_v0 = vsub.f32 %v2608_v58, %v2613_v62  ;;  %1283 = vst.msk [vmem:[#allocation3 + $0x28] sm:$0xff] %vm1060_vm6, %v2613_v62  ;;  %874 = vperm.xlu1 %1851, %v2591_v50   ;;  %869 = vperm.xlu0 %1850, %v2616_v63  }
 0x397   : > { %1281 = vst.msk [vmem:[#allocation3 + $0x18] sm:$0xff] %vm1060_vm6, %v2616_v63 }
 0x39b   : > { %v787_v2 = vpop.xlane.xlu2 %786 }
 0x39c   : > { %v2629_v3 = vmax.f32 %v2626_v1, %v787_v2  ;;  %v828_v2 = vmul.f32 1.442695, %v808_v51 }
 0x39e   : > { %v819_v4 = vsub.f32 %v2626_v1, %v2629_v3  ;;  %1293 = vst.msk [vmem:[#allocation3 + $0x78] sm:$0xff] %vm1060_vm6, %v2629_v3  ;;  %879 = vperm.xlu0 %1850, %v2613_v62   ;;  %1857 = vpow2.f32 %v828_v2 }
 0x3a3   : > { %v769_v6 = vpop.xlane.xlu2 %768 }
 0x3a4   : > { %v794_v7 = vmax.f32 %v746_v5, %v769_v6  ;;  %v824_v6 = vmul.f32 1.442695, %v806_v52 }
 0x3a6   : > { %1284 = vst.msk [vmem:[#allocation3 + $0x30] sm:$0xff] %vm1060_vm6, %v794_v7  ;;  %884 = vperm.xlu0 %1850, %v794_v7   ;;  %1859 = vpow2.f32 %v824_v6  ;;  %v810_v41 = vsub.f32 %v746_v5, %v794_v7  ;;  %v830_v5 = vmul.f32 1.442695, %v809_v0 }
 0x3a8   : > { %v832_v50 = vmul.f32 1.442695, %v810_v41 }
 0x3ab   : > { %v771_v10 = vpop.xlane.xlu2 %770  ;;  %v777_v11 = vpop.xlane.xlu0 %776 }
 0x3ac   : > { %v795_v12 = vmax.f32 %v747_v8, %v771_v10  ;;  %v2640_v13 = vmax.f32 %v2637_v9, %v777_v11  ;;  %v2683_v10 = vpop.eup %1853  ;;  %v807_v11 = vsub.f32 %v2610_v59, %v2616_v63 }
 0x3ad   : > { %v2689_v46 = vpop.eup %1855 }
 0x3ae   : > { %1285 = vst.msk [vmem:[#allocation3 + $0x38] sm:$0xff] %vm1060_vm6, %v795_v12  ;;  %904 = vperm.xlu2 %1852, %v2640_v13   ;;  %v811_v53 = vsub.f32 %v747_v8, %v795_v12  ;;  %v826_v43 = vmul.f32 1.442695, %v807_v11  ;;  %v2691_v51 = vpop.eup %1857  ;;  %v814_v59 = vsub.f32 %v2637_v9, %v2640_v13 }
 0x3af   : > { %1288 = vst.msk [vmem:[#allocation3 + $0x50] sm:$0xff] %vm1060_vm6, %v2640_v13  ;;  %v2693_v57 = vpop.eup %1859 }
 0x3b0   : > { %v834_v44 = vmul.f32 1.442695, %v811_v53  ;;  %1861 = vpow2.f32 %v826_v43  ;;  %v840_v7 = vmul.f32 1.442695, %v814_v59 }
 0x3b2   : > { %1863 = vpow2.f32 %v834_v44 }
 0x3b3   : > { %v773_v16 = vpop.xlane.xlu2 %772  ;;  %v779_v17 = vpop.xlane.xlu1 %778  ;;  %1865 = vpow2.f32 %v832_v50 }
 0x3b4   : > { %v2651_v18 = vmax.f32 %v2646_v14, %v773_v16  ;;  %v2654_v19 = vmax.f32 %v2648_v15, %v779_v17  ;;  %1867 = vpow2.f32 %v830_v5 }
 0x3b5   : > { %1869 = vpow2.f32 %v840_v7 }
 0x3b6   : > { %1286 = vst.msk [vmem:[#allocation3 + $0x40] sm:$0xff] %vm1060_vm6, %v2651_v18  ;;  %889 = vperm.xlu2 %1852, %v795_v12   ;;  %909 = vperm.xlu1 %1851, %v2654_v19   ;;  %v2703_v8 = vpop.eup %1861  ;;  %v812_v9 = vsub.f32 %v2646_v14, %v2651_v18  ;;  %v815_v14 = vsub.f32 %v2648_v15, %v2654_v19 }
 0x3b7   : > { %1289 = vst.msk [vmem:[#allocation3 + $0x58] sm:$0xff] %vm1060_vm6, %v2654_v19 }
 0x3b8   : > { %v2705_v16 = vpop.eup %1863  ;;  %v836_v62 = vmul.f32 1.442695, %v812_v9 }
 0x3b9   : > { %v2707_v17 = vpop.eup %1865 }
 0x3ba   : > { %v2714_v0 = vpop.eup %1867 }
 0x3bb   : > { %v775_v21 = vpop.xlane.xlu2 %774 }
 0x3bc   : > { %v797_v22 = vmax.f32 %v749_v20, %v775_v21 }
 0x3be   : > { %1287 = vst.msk [vmem:[#allocation3 + $0x48] sm:$0xff] %vm1060_vm6, %v797_v22  ;;  %894 = vperm.xlu2 %1852, %v2651_v18   ;;  %v813_v63 = vsub.f32 %v749_v20, %v797_v22  ;;  %v2716_v20 = vpop.eup %1869  ;;  %v842_v18 = vmul.f32 1.442695, %v815_v14 }
 0x3c0   : > { %v838_v12 = vmul.f32 1.442695, %v813_v63 }
 0x3c2   : > { %1871 = vpow2.f32 %v838_v12 }
 0x3c3   : > { %v781_v48 = vpop.xlane.xlu2 %780  ;;  %v783_v54 = vpop.xlane.xlu0 %782  ;;  %1873 = vpow2.f32 %v836_v62 }
 0x3c4   : > { %v800_v55 = vmax.f32 %v752_v24, %v781_v48  ;;  %v2666_v60 = vmax.f32 %v2663_v42, %v783_v54 }
 0x3c6   : > { %1290 = vst.msk [vmem:[#allocation3 + $0x60] sm:$0xff] %vm1060_vm6, %v800_v55  ;;  %v817_v61 = vsub.f32 %v2663_v42, %v2666_v60  ;;  %929 = vperm.xlu2 %1852, %v2629_v3   ;;  %919 = vperm.xlu0 %1850, %v2666_v60   ;;  %v816_v58 = vsub.f32 %v752_v24, %v800_v55 }
 0x3c7   : > { %1291 = vst.msk [vmem:[#allocation3 + $0x68] sm:$0xff] %vm1060_vm6, %v2666_v60  ;;  %914 = vperm.xlu1 %1851, %v800_v55   ;;  %v984_v60 = vld [vmem:[#allocation4 + $0x20] sm:$0xff] }
 0x3c8   : > { %v844_v13 = vmul.f32 1.442695, %v816_v58  ;;  %v2718_v21 = vpop.eup %1871 }
 0x3ca   : > { %1875 = vpow2.f32 %v844_v13 }
 0x3cb   : > { %1877 = vpow2.f32 %v842_v18 }
 0x3ce   : > { %1157 = vperm.xlu2 %1852, %v2683_v10   ;;  %924 = vperm.xlu0 %1850, %v2588_v49  }
 0x3cf   : > { %899 = vperm.xlu1 %1851, %v797_v22   ;;  %v2725_v22 = vpop.eup %1873 }
 0x3d0   : > { %v2727_v23 = vpop.eup %1875 }
 0x3d1   : > { %v2731_v24 = vpop.eup %1877 }
 0x3d6   : > { %1172 = vperm.xlu2 %1852, %v2691_v51   ;;  %1152 = vperm.xlu0 %1850, %v2689_v46  }
 0x3d7   : > { %1162 = vperm.xlu1 %1851, %v2693_v57  }
 0x3de   : > { %1187 = vperm.xlu2 %1852, %v2705_v16   ;;  %1167 = vperm.xlu0 %1850, %v2703_v8  }
 0x3df   : > { %1182 = vperm.xlu1 %1851, %v2707_v17  }
 0x3e6   : > { %1202 = vperm.xlu2 %1852, %v2716_v20   ;;  %1177 = vperm.xlu0 %1850, %v2714_v0  }
 0x3e7   : > { %1197 = vperm.xlu1 %1851, %v2718_v21  }
 0x3e8   : > { %v865_v19 = vpop.permute.xlu2 %864 }
 0x3e9   : > { %v934_v43 = vsub.f32 %v2538_v30, %v865_v19 }
 0x3eb   : > { %v952_v59 = vmul.f32 1.442695, %v934_v43 }
 0x3ee   : > { %1192 = vperm.xlu0 %1850, %v2725_v22  }
 0x3ef   : > { %1212 = vperm.xlu1 %1851, %v2727_v23  }
 0x3f0   : > { %v855_v47 = vpop.permute.xlu0 %854 }
 0x3f1   : > { %v932_v15 = vsub.f32 %v2525_v25, %v855_v47 }
 0x3f3   : > { %v948_v48 = vmul.f32 1.442695, %v932_v15 }
 0x3f5   : > { %1879 = vpow2.f32 %v948_v48 }
 0x3f6   : > { %1207 = vperm.xlu0 %1850, %v2731_v24  }
 0x3fb   : > { %v1880_v6 = vpop.eup %1879 }
 0x400   : > { %v860_v54 = vpop.permute.xlu1 %859 }
 0x401   : > { %v933_v55 = vsub.f32 %v2532_v28, %v860_v54 }
 0x403   : > { %v950_v52 = vmul.f32 1.442695, %v933_v55 }
 0x405   : > { %1881 = vpow2.f32 %v950_v52 }
 0x408   : > { %v905_v56 = vpop.permute.xlu2 %904  ;;  %v870_v2 = vpop.permute.xlu0 %869 }
 0x409   : > { %v935_v53 = vsub.f32 %v2544_v32, %v870_v2  ;;  %v875_v44 = vpop.permute.xlu1 %874  ;;  %v942_v47 = vsub.f32 %v2558_v37, %v905_v56 }
 0x40a   : > { %v936_v63 = vsub.f32 %v2527_v26, %v875_v44 }
 0x40b   : > { %v1882_v11 = vpop.eup %1881  ;;  %v954_v25 = vmul.f32 1.442695, %v935_v53 }
 0x40c   : > { %v1077_v41 = vpack.c.bf16 %v1882_v11, %v1880_v6  ;;  %v956_v28 = vmul.f32 1.442695, %v936_v63 }
 0x40d   : > { %1883 = vpow2.f32 %v954_v25 }
 0x40e   : > { %1093 = vmatmul.bf16.vlgmr.msra.gmra.mxu2 %v1077_v41  ;;  %1885 = vpow2.f32 %v952_v59 }
 0x40f   : > { %1887 = vpow2.f32 %v956_v28 }
 0x410   : > { %v890_v50 = vpop.permute.xlu2 %889  ;;  %v880_v5 = vpop.permute.xlu0 %879 }
 0x411   : > { %v937_v32 = vsub.f32 %v2534_v29, %v880_v5  ;;  %v939_v26 = vsub.f32 %v2546_v33, %v890_v50  ;;  %v968_v29 = vmul.f32 1.442695, %v942_v47 }
 0x413   : > { %v1884_v12 = vpop.eup %1883  ;;  %v958_v62 = vmul.f32 1.442695, %v937_v32  ;;  %v962_v48 = vmul.f32 1.442695, %v939_v26 }
 0x414   : > { %v2739_v9 = vpop.eup %1885 }
 0x415   : > { %v1078_v30 = vpack.c.bf16 %v1884_v12, %v2739_v9  ;;  %v1888_v58 = vpop.eup %1887  ;;  %1889 = vpow2.f32 %v958_v62 }
 0x418   : > { %v895_v7 = vpop.permute.xlu2 %894  ;;  %v885_v14 = vpop.permute.xlu0 %884 }
 0x419   : > { %1012 = vadd.xlane.f32.xlu1 %v1880_v6  ;;  %v938_v19 = vsub.f32 %v2540_v31, %v885_v14  ;;  %v940_v50 = vsub.f32 %v2552_v35, %v895_v7  ;;  %v818_v7 = vsub.f32 %v2583_v45, %v2588_v49  ;;  %v850_v45 = vmul.f32 1.442695, %v819_v4 }
 0x41b   : > { %v960_v54 = vmul.f32 1.442695, %v938_v19  ;;  %v1890_v52 = vpop.eup %1889  ;;  %v964_v28 = vmul.f32 1.442695, %v940_v50 }
 0x41e   : > { %1098 = vmatmul.bf16.gmra.mxu2 %v1078_v30 }
 0x420   : > { %v930_v13 = vpop.permute.xlu2 %929  ;;  %1020 = vadd.xlane.f32.xlu0 %v1888_v58 }
 0x421   : > { %v947_v18 = vsub.f32 %v2550_v34, %v930_v13  ;;  %v1079_v34 = vpack.c.bf16 %v1890_v52, %v1888_v58 }
 0x423   : > { %v978_v15 = vmul.f32 1.442695, %v947_v18 }
 0x425   : > { %1891 = vpow2.f32 %v978_v15 }
 0x426   : > { %1893 = vpow2.f32 %v962_v48 }
 0x427   : > { %1895 = vpow2.f32 %v968_v29 }
 0x428   : > { %1014 = vadd.xlane.f32.xlu0 %v1882_v11  ;;  %v910_v55 = vpop.permute.xlu1 %909  ;;  %1897 = vpow2.f32 %v960_v54 }
 0x429   : > { %v943_v2 = vsub.f32 %v2562_v38, %v910_v55 }
 0x42b   : > { %v1892_v33 = vpop.eup %1891  ;;  %v970_v6 = vmul.f32 1.442695, %v943_v2 }
 0x42c   : > { %1042 = vadd.xlane.f32.xlu1 %v1892_v33  ;;  %v1894_v37 = vpop.eup %1893 }
 0x42d   : > { %1899 = vpow2.f32 %v970_v6  ;;  %v1896_v31 = vpop.eup %1895 }
 0x42e   : > { %1103 = vmatmul.bf16.gmra.mxu2 %v1079_v34  ;;  %v1898_v56 = vpop.eup %1897  ;;  %v1134_v34 = vld [vmem:[#allocation5] sm:$0xff] }
 0x42f   : > { %v1080_v63 = vpack.c.bf16 %v1894_v37, %v1898_v56 }
 0x430   : > { %1026 = vadd.xlane.f32.xlu0 %v1894_v37 }
 0x433   : > { %v1900_v53 = vpop.eup %1899 }
 0x434   : > { %1024 = vadd.xlane.f32.xlu1 %v1898_v56  ;;  %v1082_v11 = vpack.c.bf16 %v1900_v53, %v1896_v31  ;;  %v1000_v56 = vmul.f32 %v2691_v51, %v984_v60  ;;  %v1136_v51 = vld [vmem:[#allocation5 + $0x10] sm:$0xff] }
 0x436   : > { %1118 = vmatmul.bf16.vlgmr.msrb.gmra.mxu3 %v1082_v11 }
 0x438   : > { %v920_v41 = vpop.permute.xlu0 %919  ;;  %1032 = vadd.xlane.f32.xlu0 %v1896_v31 }
 0x439   : > { %v945_v38 = vsub.f32 %v2569_v40, %v920_v41  ;;  %v915_v43 = vpop.permute.xlu1 %914  ;;  %v1135_v41 = vld [vmem:[#allocation5 + $0x8] sm:$0xff] }
 0x43a   : > { %v944_v44 = vsub.f32 %v2566_v39, %v915_v43 }
 0x43b   : > { %v974_v25 = vmul.f32 1.442695, %v945_v38  ;;  %v1158_v38 = vpop.permute.xlu2 %1157 }
 0x43c   : > { %v972_v59 = vmul.f32 1.442695, %v944_v44  ;;  %1018 = vadd.xlane.f32.xlu1 %v1884_v12  ;;  %v1231_v43 = vmul.f32 %v1158_v38, %v1135_v41 }
 0x43d   : > { %1901 = vpow2.f32 %v974_v25 }
 0x43e   : > { %1903 = vpow2.f32 %v972_v59  ;;  %1108 = vmatmul.bf16.gmra.mxu2 %v1080_v63  ;;  %v995_v63 = vld [vmem:[#allocation4 + $0x78] sm:$0xff] }
 0x43f   : > { %1905 = vpow2.f32 %v964_v28 }
 0x440   : > { %v925_v5 = vpop.permute.xlu0 %924 }
 0x441   : > { %v946_v32 = vsub.f32 %v2530_v27, %v925_v5  ;;  %v900_v30 = vpop.permute.xlu1 %899  ;;  %v848_v27 = vmul.f32 1.442695, %v818_v7  ;;  %v986_v7 = vld [vmem:[#allocation4 + $0x30] sm:$0xff] }
 0x442   : > { %v941_v58 = vsub.f32 %v2555_v36, %v900_v30  ;;  %v987_v30 = vld [vmem:[#allocation4 + $0x38] sm:$0xff] }
 0x443   : > { %v1902_v40 = vpop.eup %1901  ;;  %v976_v62 = vmul.f32 1.442695, %v946_v32 }
 0x444   : > { %v1904_v13 = vpop.eup %1903  ;;  %v966_v39 = vmul.f32 1.442695, %v941_v58  ;;  %1038 = vadd.xlane.f32.xlu0 %v1902_v40 }
 0x445   : > { %1907 = vpow2.f32 %v976_v62  ;;  %v1083_v35 = vpack.c.bf16 %v1902_v40, %v1904_v13  ;;  %v1906_v12 = vpop.eup %1905  ;;  %v1173_v62 = vpop.permute.xlu2 %1172 }
 0x446   : > { %1909 = vpow2.f32 %v966_v39 }
 0x447   : > { %1123 = vmatmul.bf16.gmra.mxu3 %v1083_v35  ;;  %1911 = vpow2.f32 %v848_v27 }
 0x448   : > { %v1153_v49 = vpop.permute.xlu0 %1152  ;;  %1913 = vpow2.f32 %v850_v45 }
 0x449   : > { %v1163_v15 = vpop.permute.xlu1 %1162 }
 0x44a   : > { %v1232_v58 = vmul.f32 %v1163_v15, %v1136_v51 }
 0x44b   : > { %v1908_v26 = vpop.eup %1907 }
 0x44c   : > { %v1910_v14 = vpop.eup %1909  ;;  %1040 = vadd.xlane.f32.xlu2 %v1908_v26  ;;  %v1084_v18 = vpack.c.bf16 %v1892_v33, %v1908_v26  ;;  %v1137_v26 = vld [vmem:[#allocation5 + $0x18] sm:$0xff] }
 0x44d   : > { %1030 = vadd.xlane.f32.xlu1 %v1910_v14  ;;  %v1081_v36 = vpack.c.bf16 %v1910_v14, %v1906_v12  ;;  %v2755_v47 = vpop.eup %1911  ;;  %v1002_v14 = vmul.f32 %v2707_v17, %v986_v7 }
 0x44e   : > { %v1914_v19 = vpop.eup %1913 }
 0x44f   : > { %1113 = vmatmul.bf16.gmra.mxu2 %v1081_v36  ;;  %v1011_v5 = vmul.f32 %v1914_v19, %v995_v63  ;;  %v990_v36 = vld [vmem:[#allocation4 + $0x50] sm:$0xff] }
 0x450   : > { %v1168_v48 = vpop.permute.xlu0 %1167  ;;  %v1140_v63 = vld [vmem:[#allocation5 + $0x30] sm:$0xff] }
 0x451   : > { %v2762_v29 = vpop.permute.xlu1 %1182 }
 0x454   : > { %1022 = vadd.xlane.f32.xlu2 %v1890_v52  ;;  %v980_v52 = vld [vmem:[#allocation4] sm:$0xff] }
 0x455   : > { %1036 = vadd.xlane.f32.xlu1 %v1904_v13  ;;  %v996_v33 = vmul.f32 %v2689_v46, %v980_v52  ;;  %v981_v46 = vld [vmem:[#allocation4 + $0x8] sm:$0xff]  ;;  %v983_v52 = vld [vmem:[#allocation4 + $0x18] sm:$0xff] }
 0x456   : > { %v997_v50 = vmul.f32 %v2683_v10, %v981_v46  ;;  %v1003_v10 = vmul.f32 %v2705_v16, %v987_v30  ;;  %v1006_v16 = vmul.f32 %v2716_v20, %v990_v36  ;;  %v999_v17 = vmul.f32 %v2703_v8, %v983_v52  ;;  %v1144_v20 = vld [vmem:[#allocation5 + $0x50] sm:$0xff] }
 0x457   : > { %1128 = vmatmul.bf16.gmra.mxu3 %v1084_v18  ;;  %v1233_v18 = vmul.f32 %v1168_v48, %v1137_v26 }
 0x458   : > { %1222 = vperm.xlu0 %1850, %v2755_v47   ;;  %v2764_v54 = vpop.permute.xlu0 %1177 }
 0x459   : > { %v2769_v55 = vpop.permute.xlu1 %1197 }
 0x45c   : > { %1016 = vadd.xlane.f32.xlu2 %v2739_v9  ;;  %v846_v9 = vmul.f32 1.442695, %v817_v61  ;;  %v1230_v61 = vmul.f32 %v1153_v49, %v1134_v34 }
 0x45e   : > { %1915 = vpow2.f32 %v846_v9 }
 0x460   : > { %v2771_v1 = vpop.permute.xlu0 %1192 }
 0x461   : > { %v2775_v4 = vpop.permute.xlu1 %1212 }
 0x464   : > { %1028 = vadd.xlane.f32.xlu2 %v1906_v12  ;;  %v2773_v3 = vpop.eup %1915 }
 0x468   : > { %v2778_v2 = vpop.permute.xlu0 %1207 }
 0x46c   : > { %1034 = vadd.xlane.f32.xlu2 %v1900_v53 }
 0x46e   : > { %1227 = vperm.xlu1 %1851, %v1914_v19   ;;  %v1188_v19 = vpop.permute.xlu2 %1187 }
 0x484   : > { %1217 = vperm.xlu2 %1852, %v2773_v3  }
 0x48c   : > { %v1013_v6 = vpop.xlane.xlu1 %1012 }
 0x48d   : > { %v1044_v42 = vadd.f32 %v1013_v6, %v996_v33  ;;  %v1138_v6 = vld [vmem:[#allocation5 + $0x20] sm:$0xff] }
 0x48e   : > { %v1234_v48 = vmul.f32 %v1173_v62, %v1138_v6 }
 0x48f   : > { %1061 = vst.msk [vmem:[#allocation4] sm:$0xff] %vm1060_vm6, %v1044_v42 }
 0x491   : > { %v1094_v37 = vpop.f32.mrf.mxu2 }
 0x492   : > { %v1246_v31 = vadd.f32 %v1230_v61, %v1094_v37  ;;  %v993_v37 = vld [vmem:[#allocation4 + $0x68] sm:$0xff] }
 0x493   : > { %v1021_v53 = vpop.xlane.xlu0 %1020 }
 0x494   : > { %1262 = vst.msk [vmem:[#allocation5] sm:$0xff] %vm542_vm3, %v1246_v31  ;;  %v1048_v11 = vadd.f32 %v1021_v53, %v1000_v56  ;;  %v1203_v31 = vpop.permute.xlu2 %1202  ;;  %v1139_v56 = vld [vmem:[#allocation5 + $0x28] sm:$0xff]  ;;  %v1009_v53 = vmul.f32 %v2773_v3, %v993_v37 }
 0x495   : > { %v1240_v41 = vmul.f32 %v1203_v31, %v1144_v20  ;;  %v1235_v38 = vmul.f32 %v2764_v54, %v1139_v56 }
 0x496   : > { %1065 = vst.msk [vmem:[#allocation4 + $0x20] sm:$0xff] %vm1060_vm6, %v1048_v11 }
 0x499   : > { %v1096_v44 = vpop.f32.mrf.mxu2 }
 0x49a   : > { %v1247_v25 = vadd.f32 %v1231_v43, %v1096_v44 }
 0x49b   : > { %v1015_v59 = vpop.xlane.xlu0 %1014 }
 0x49c   : > { %1263 = vst.msk [vmem:[#allocation5 + $0x8] sm:$0xff] %vm542_vm3, %v1247_v25  ;;  %v1045_v28 = vadd.f32 %v1015_v59, %v997_v50  ;;  %v994_v50 = vld [vmem:[#allocation4 + $0x70] sm:$0xff]  ;;  %v989_v59 = vld [vmem:[#allocation4 + $0x48] sm:$0xff] }
 0x49d   : > { %v1010_v3 = vmul.f32 %v2755_v47, %v994_v50  ;;  %v1005_v54 = vmul.f32 %v2718_v21, %v989_v59  ;;  %v992_v47 = vld [vmem:[#allocation4 + $0x60] sm:$0xff]  ;;  %v1141_v21 = vld [vmem:[#allocation5 + $0x38] sm:$0xff]  ;;  %v1147_v50 = vld [vmem:[#allocation5 + $0x68] sm:$0xff] }
 0x49e   : > { %1062 = vst.msk [vmem:[#allocation4 + $0x8] sm:$0xff] %vm1060_vm6, %v1045_v28  ;;  %v1145_v28 = vld [vmem:[#allocation5 + $0x58] sm:$0xff]  ;;  %v1237_v26 = vmul.f32 %v1188_v19, %v1141_v21 }
 0x49f   : > { %v1043_v32 = vpop.xlane.xlu1 %1042 }
 0x4a0   : > { %v1059_v40 = vadd.f32 %v1043_v32, %v1011_v5  ;;  %v1236_v5 = vmul.f32 %v2762_v29, %v1140_v63  ;;  %v1241_v32 = vmul.f32 %v2778_v2, %v1145_v28  ;;  %v1146_v29 = vld [vmem:[#allocation5 + $0x60] sm:$0xff] }
 0x4a1   : > { %v1099_v13 = vpop.f32.mrf.mxu2  ;;  %v1242_v36 = vmul.f32 %v2775_v4, %v1146_v29 }
 0x4a2   : > { %1076 = vst.msk [vmem:[#allocation4 + $0x78] sm:$0xff] %vm1060_vm6, %v1059_v40  ;;  %v1248_v39 = vadd.f32 %v1232_v58, %v1099_v13 }
 0x4a3   : > { %v1027_v35 = vpop.xlane.xlu0 %1026 }
 0x4a4   : > { %1264 = vst.msk [vmem:[#allocation5 + $0x10] sm:$0xff] %vm542_vm3, %v1248_v39  ;;  %v1051_v12 = vadd.f32 %v1027_v35, %v1003_v10  ;;  %v985_v35 = vld [vmem:[#allocation4 + $0x28] sm:$0xff] }
 0x4a5   : > { %v1001_v2 = vmul.f32 %v2714_v0, %v985_v35  ;;  %v1142_v0 = vld [vmem:[#allocation5 + $0x40] sm:$0xff] }
 0x4a6   : > { %1068 = vst.msk [vmem:[#allocation4 + $0x38] sm:$0xff] %vm1060_vm6, %v1051_v12  ;;  %v1008_v12 = vmul.f32 %v2727_v23, %v992_v47  ;;  %v1238_v4 = vmul.f32 %v2771_v1, %v1142_v0 }
 0x4a7   : > { %v1025_v27 = vpop.xlane.xlu1 %1024 }
 0x4a8   : > { %v1050_v45 = vadd.f32 %v1025_v27, %v1002_v14 }
 0x4a9   : > { %v1101_v49 = vpop.f32.mrf.mxu2 }
 0x4aa   : > { %1067 = vst.msk [vmem:[#allocation4 + $0x30] sm:$0xff] %vm1060_vm6, %v1050_v45  ;;  %v1249_v15 = vadd.f32 %v1233_v18, %v1101_v49 }
 0x4ab   : > { %v1033_v9 = vpop.xlane.xlu0 %1032 }
 0x4ac   : > { %1265 = vst.msk [vmem:[#allocation5 + $0x18] sm:$0xff] %vm542_vm3, %v1249_v15  ;;  %v1054_v33 = vadd.f32 %v1033_v9, %v1006_v16  ;;  %v982_v9 = vld [vmem:[#allocation4 + $0x10] sm:$0xff] }
 0x4ad   : > { %v998_v23 = vmul.f32 %v2693_v57, %v982_v9 }
 0x4ae   : > { %1071 = vst.msk [vmem:[#allocation4 + $0x50] sm:$0xff] %vm1060_vm6, %v1054_v33 }
 0x4af   : > { %v1019_v34 = vpop.xlane.xlu1 %1018 }
 0x4b0   : > { %v1047_v42 = vadd.f32 %v1019_v34, %v999_v17  ;;  %v988_v34 = vld [vmem:[#allocation4 + $0x40] sm:$0xff] }
 0x4b1   : > { %v1104_v60 = vpop.f32.mrf.mxu2 }
 0x4b2   : > { %1064 = vst.msk [vmem:[#allocation4 + $0x18] sm:$0xff] %vm1060_vm6, %v1047_v42  ;;  %v1250_v61 = vadd.f32 %v1234_v48, %v1104_v60  ;;  %v1143_v48 = vld [vmem:[#allocation5 + $0x48] sm:$0xff]  ;;  %v1148_v42 = vld [vmem:[#allocation5 + $0x70] sm:$0xff] }
 0x4b3   : > { %v1239_v57 = vmul.f32 %v2769_v55, %v1143_v48 }
 0x4b4   : > { %1266 = vst.msk [vmem:[#allocation5 + $0x20] sm:$0xff] %vm542_vm3, %v1250_v61  ;;  %v1004_v61 = vmul.f32 %v2725_v22, %v988_v34 }
 0x4b7   : > { %v1039_v11 = vpop.xlane.xlu0 %1038 }
 0x4b8   : > { %v1057_v8 = vadd.f32 %v1039_v11, %v1009_v53 }
 0x4b9   : > { %v1106_v46 = vpop.f32.mrf.mxu2  ;;  %v1119_v43 = vpop.f32.mrf.mxu3 }
 0x4ba   : > { %1074 = vst.msk [vmem:[#allocation4 + $0x68] sm:$0xff] %vm1060_vm6, %v1057_v8  ;;  %v1251_v44 = vadd.f32 %v1235_v38, %v1106_v46  ;;  %v1256_v25 = vadd.f32 %v1240_v41, %v1119_v43  ;;  %v991_v41 = vld [vmem:[#allocation4 + $0x58] sm:$0xff] }
 0x4bb   : > { %v1007_v38 = vmul.f32 %v2731_v24, %v991_v41  ;;  %v1149_v8 = vld [vmem:[#allocation5 + $0x78] sm:$0xff] }
 0x4bc   : > { %1267 = vst.msk [vmem:[#allocation5 + $0x28] sm:$0xff] %vm542_vm3, %v1251_v44 }
 0x4bd   : > { %1272 = vst.msk [vmem:[#allocation5 + $0x50] sm:$0xff] %vm542_vm3, %v1256_v25 }
 0x4bf   : > { %v1041_v51 = vpop.xlane.xlu2 %1040 }
 0x4c0   : > { %v1058_v30 = vadd.f32 %v1041_v51, %v1010_v3  ;;  %v1031_v58 = vpop.xlane.xlu1 %1030 }
 0x4c1   : > { %v1053_v40 = vadd.f32 %v1031_v58, %v1005_v54  ;;  %v1109_v62 = vpop.f32.mrf.mxu2  ;;  %v1121_v13 = vpop.f32.mrf.mxu3 }
 0x4c2   : > { %1075 = vst.msk [vmem:[#allocation4 + $0x70] sm:$0xff] %vm1060_vm6, %v1058_v30  ;;  %v1252_v39 = vadd.f32 %v1236_v5, %v1109_v62  ;;  %v1257_v10 = vadd.f32 %v1241_v32, %v1121_v13 }
 0x4c3   : > { %1070 = vst.msk [vmem:[#allocation4 + $0x48] sm:$0xff] %vm1060_vm6, %v1053_v40 }
 0x4c4   : > { %1268 = vst.msk [vmem:[#allocation5 + $0x30] sm:$0xff] %vm542_vm3, %v1252_v39 }
 0x4c5   : > { %1273 = vst.msk [vmem:[#allocation5 + $0x58] sm:$0xff] %vm542_vm3, %v1257_v10 }
 0x4c7   : > { %v1023_v7 = vpop.xlane.xlu2 %1022 }
 0x4c8   : > { %v1049_v14 = vadd.f32 %v1023_v7, %v1001_v2  ;;  %v1037_v27 = vpop.xlane.xlu1 %1036 }
 0x4c9   : > { %v1056_v18 = vadd.f32 %v1037_v27, %v1008_v12  ;;  %v1111_v45 = vpop.f32.mrf.mxu2 }
 0x4ca   : > { %1066 = vst.msk [vmem:[#allocation4 + $0x28] sm:$0xff] %vm1060_vm6, %v1049_v14  ;;  %v1253_v49 = vadd.f32 %v1237_v26, %v1111_v45  ;;  %v1124_v15 = vpop.f32.mrf.mxu3  ;;  %v1223_v60 = vpop.permute.xlu0 %1222 }
 0x4cb   : > { %1073 = vst.msk [vmem:[#allocation4 + $0x60] sm:$0xff] %vm1060_vm6, %v1056_v18  ;;  %v1258_v16 = vadd.f32 %v1242_v36, %v1124_v15  ;;  %v1244_v31 = vmul.f32 %v1223_v60, %v1148_v42 }
 0x4cc   : > { %1269 = vst.msk [vmem:[#allocation5 + $0x38] sm:$0xff] %vm542_vm3, %v1253_v49 }
 0x4cd   : > { %1274 = vst.msk [vmem:[#allocation5 + $0x60] sm:$0xff] %vm542_vm3, %v1258_v16 }
 0x4cf   : > { %v1017_v19 = vpop.xlane.xlu2 %1016 }
 0x4d0   : > { %v1046_v52 = vadd.f32 %v1017_v19, %v998_v23 }
 0x4d2   : > { %1063 = vst.msk [vmem:[#allocation4 + $0x10] sm:$0xff] %vm1060_vm6, %v1046_v52  ;;  %v1114_v33 = vpop.f32.mrf.mxu2  ;;  %v1126_v6 = vpop.f32.mrf.mxu3 }
 0x4d3   : > { %v1254_v17 = vadd.f32 %v1238_v4, %v1114_v33 }
 0x4d5   : > { %1270 = vst.msk [vmem:[#allocation5 + $0x40] sm:$0xff] %vm542_vm3, %v1254_v17 }
 0x4d7   : > { %v1029_v37 = vpop.xlane.xlu2 %1028 }
 0x4d8   : > { %v1052_v20 = vadd.f32 %v1029_v37, %v1004_v61 }
 0x4da   : > { %1069 = vst.msk [vmem:[#allocation4 + $0x40] sm:$0xff] %vm1060_vm6, %v1052_v20  ;;  %v1116_v1 = vpop.f32.mrf.mxu2  ;;  %v1129_v56 = vpop.f32.mrf.mxu3 }
 0x4db   : > { %v1255_v53 = vadd.f32 %v1239_v57, %v1116_v1  ;;  %v1260_v11 = vadd.f32 %v1244_v31, %v1129_v56 }
 0x4dd   : > { %1271 = vst.msk [vmem:[#allocation5 + $0x48] sm:$0xff] %vm542_vm3, %v1255_v53 }
 0x4de   : > { %1276 = vst.msk [vmem:[#allocation5 + $0x70] sm:$0xff] %vm542_vm3, %v1260_v11 }
 0x4df   : > { %v1035_v22 = vpop.xlane.xlu2 %1034 }
 0x4e0   : > { %v1055_v46 = vadd.f32 %v1035_v22, %v1007_v38  ;;  %v1228_v43 = vpop.permute.xlu1 %1227 }
 0x4e1   : > { %v1245_v44 = vmul.f32 %v1228_v43, %v1149_v8 }
 0x4e2   : > { %1072 = vst.msk [vmem:[#allocation4 + $0x58] sm:$0xff] %vm1060_vm6, %v1055_v46  ;;  %v1131_v55 = vpop.f32.mrf.mxu3 }
 0x4e3   : > { %v1261_v25 = vadd.f32 %v1245_v44, %v1131_v55 }
 0x4e5   : > { %1277 = vst.msk [vmem:[#allocation5 + $0x78] sm:$0xff] %vm542_vm3, %v1261_v25 }
 0x4e7   : > { %v1218_v59 = vpop.permute.xlu2 %1217 }
 0x4e8   : > { %v1243_v63 = vmul.f32 %v1218_v59, %v1147_v50  ;;  %1297 = sbr.rel (%p1695_p7) target bundleno = 1581 (0x62d), region = 64 }
 0x4ea   : > { %v1259_v28 = vadd.f32 %v1243_v63, %v1126_v6 }
 0x4ec   : > { %1275 = vst.msk [vmem:[#allocation5 + $0x68] sm:$0xff] %vm542_vm3, %v1259_v28 }
 0x4ed   : > { %v1300_v24 = vld [vmem:[#allocation4 + $0x10] sm:$0xff]  ;;  %v1298_v3 = vld [vmem:[#allocation4] sm:$0xff]  ;;  %v2163_v51 = vmov 0   ;;  %v1301_v54 = vld [vmem:[#allocation4 + $0x18] sm:$0xff] }
 0x4ee   : > { %1918 = vset.pattern.permute.xlu1 %v2163_v51  ;;  %1917 = vset.pattern.permute.xlu0 %v2163_v51  ;;  %1920 = vrcp.f32 %v1300_v24  ;;  %v1302_v5 = vld [vmem:[#allocation4 + $0x20] sm:$0xff]  ;;  %v1299_v32 = vld [vmem:[#allocation4 + $0x8] sm:$0xff]  ;;  %v1305_v13 = vld [vmem:[#allocation4 + $0x38] sm:$0xff] }
 0x4ef   : > { %1922 = vrcp.f32 %v1298_v3  ;;  %1919 = vset.pattern.permute.xlu2 %v2163_v51  ;;  %v1303_v40 = vld [vmem:[#allocation4 + $0x28] sm:$0xff]  ;;  %v1304_v10 = vld [vmem:[#allocation4 + $0x30] sm:$0xff]  ;;  %v1306_v47 = vld [vmem:[#allocation4 + $0x40] sm:$0xff] }
 0x4f0   : > { %1924 = vrcp.f32 %v1301_v54  ;;  %v1308_v29 = vld [vmem:[#allocation4 + $0x50] sm:$0xff]  ;;  %v1307_v7 = vld [vmem:[#allocation4 + $0x48] sm:$0xff]  ;;  %v1309_v26 = vld [vmem:[#allocation4 + $0x58] sm:$0xff] }
 0x4f1   : > { %1926 = vrcp.f32 %v1302_v5  ;;  %v1311_v27 = vld [vmem:[#allocation4 + $0x68] sm:$0xff]  ;;  %v1310_v18 = vld [vmem:[#allocation4 + $0x60] sm:$0xff]  ;;  %v1312_v49 = vld [vmem:[#allocation4 + $0x70] sm:$0xff] }
 0x4f2   : > { %1928 = vrcp.f32 %v1299_v32  ;;  %v1313_v9 = vld [vmem:[#allocation4 + $0x78] sm:$0xff]  ;;  %v1330_v52 = vld [vmem:[#allocation5] sm:$0xff]  ;;  %v1331_v6 = vld [vmem:[#allocation5 + $0x8] sm:$0xff] }
 0x4f3   : > { %1930 = vrcp.f32 %v1303_v40  ;;  %v1332_v48 = vld [vmem:[#allocation5 + $0x10] sm:$0xff]  ;;  %v1333_v61 = vld [vmem:[#allocation5 + $0x18] sm:$0xff]  ;;  %v1334_v57 = vld [vmem:[#allocation5 + $0x20] sm:$0xff] }
 0x4f4   : > { %v1921_v30 = vpop.eup %1920  ;;  %1932 = vrcp.f32 %v1305_v13  ;;  %v1335_v56 = vld [vmem:[#allocation5 + $0x28] sm:$0xff]  ;;  %v1336_v41 = vld [vmem:[#allocation5 + $0x30] sm:$0xff]  ;;  %v1337_v22 = vld [vmem:[#allocation5 + $0x38] sm:$0xff] }
 0x4f5   : > { %v1923_v58 = vpop.eup %1922  ;;  %1358 = vperm.xlu1 %1918, %v1921_v30   ;;  %1934 = vrcp.f32 %v1304_v10  ;;  %v1338_v44 = vld [vmem:[#allocation5 + $0x40] sm:$0xff]  ;;  %v1339_v50 = vld [vmem:[#allocation5 + $0x48] sm:$0xff]  ;;  %v1340_v28 = vld [vmem:[#allocation5 + $0x50] sm:$0xff] }
 0x4f6   : > { %1348 = vperm.xlu0 %1917, %v1923_v58   ;;  %v1925_v62 = vpop.eup %1924  ;;  %1936 = vrcp.f32 %v1306_v47  ;;  %v1341_v51 = vld [vmem:[#allocation5 + $0x58] sm:$0xff]  ;;  %v1342_v32 = vld [vmem:[#allocation5 + $0x60] sm:$0xff]  ;;  %v1343_v40 = vld [vmem:[#allocation5 + $0x68] sm:$0xff] }
 0x4f7   : > { %v1927_v39 = vpop.eup %1926  ;;  %1938 = vrcp.f32 %v1308_v29  ;;  %v1345_v47 = vld [vmem:[#allocation5 + $0x78] sm:$0xff] }
 0x4f8   : > { %v1929_v35 = vpop.eup %1928  ;;  %1368 = vperm.xlu2 %1919, %v1927_v39   ;;  %1940 = vrcp.f32 %v1307_v7  ;;  %v1344_v39 = vld [vmem:[#allocation5 + $0x70] sm:$0xff]  ;;  %v1480_v7 = vld [vmem:[%s2398_s12] sm:$0xff] }
 0x4f9   : > { %v1931_v21 = vpop.eup %1930  ;;  %1942 = vrcp.f32 %v1309_v26 }
 0x4fa   : > { %v1933_v2 = vpop.eup %1932  ;;  %1944 = vrcp.f32 %v1311_v27  ;;  %v1481_v27 = vld [vmem:[%s2398_s12 + $0x8] sm:$0xff] }
 0x4fb   : > { %v1935_v12 = vpop.eup %1934  ;;  %1946 = vrcp.f32 %v1310_v18 }
 0x4fc   : > { %v1937_v14 = vpop.eup %1936  ;;  %1948 = vrcp.f32 %v1312_v49  ;;  %v1482_v49 = vld [vmem:[%s2398_s12 + $0x10] sm:$0xff] }
 0x4fd   : > { %1363 = vperm.xlu1 %1918, %v1925_v62   ;;  %v1939_v36 = vpop.eup %1938  ;;  %1950 = vrcp.f32 %v1313_v9 }
 0x4fe   : > { %1353 = vperm.xlu0 %1917, %v1929_v35   ;;  %v1941_v45 = vpop.eup %1940 }
 0x4ff   : > { %v1943_v15 = vpop.eup %1942 }
 0x500   : > { %1373 = vperm.xlu2 %1919, %v1931_v21   ;;  %v1945_v16 = vpop.eup %1944 }
 0x501   : > { %v1947_v0 = vpop.eup %1946 }
 0x502   : > { %v1949_v23 = vpop.eup %1948 }
 0x503   : > { %v1951_v19 = vpop.eup %1950 }
 0x505   : > { %1383 = vperm.xlu1 %1918, %v1933_v2   ;;  %v1475_v2 = vstv %s1442_s9 }
 0x506   : > { %1378 = vperm.xlu0 %1917, %v1935_v12  }
 0x508   : > { %1388 = vperm.xlu2 %1919, %v1937_v14  }
 0x50d   : > { %1398 = vperm.xlu1 %1918, %v1939_v36  }
 0x50e   : > { %1393 = vperm.xlu0 %1917, %v1941_v45  }
 0x510   : > { %1403 = vperm.xlu2 %1919, %v1943_v15  }
 0x515   : > { %1413 = vperm.xlu1 %1918, %v1945_v16  }
 0x516   : > { %1408 = vperm.xlu0 %1917, %v1947_v0   ;;  %v1483_v0 = vld [vmem:[%s2398_s12 + $0x18] sm:$0xff] }
 0x518   : > { %1418 = vperm.xlu2 %1919, %v1949_v23  }
 0x51e   : > { %1423 = vperm.xlu0 %1917, %v1951_v19  }
 0x552   : > { %v1369_v31 = vpop.permute.xlu2 %1368 }
 0x553   : > { %v1430_v1 = vmul.f32 %v1369_v31, %v1334_v57 }
 0x55a   : > { %v1374_v53 = vpop.permute.xlu2 %1373 }
 0x55b   : > { %v1431_v11 = vmul.f32 %v1374_v53, %v1335_v56 }
 0x562   : > { %v1389_v55 = vpop.permute.xlu2 %1388 }
 0x563   : > { %v1434_v25 = vmul.f32 %v1389_v55, %v1338_v44 }
 0x567   : > { %v1359_v42 = vpop.permute.xlu1 %1358 }
 0x568   : > { %v1349_v4 = vpop.permute.xlu0 %1348  ;;  %v1428_v60 = vmul.f32 %v1359_v42, %v1332_v48 }
 0x569   : > { %v1426_v33 = vmul.f32 %v1349_v4, %v1330_v52 }
 0x56a   : > { %v1404_v54 = vpop.permute.xlu2 %1403 }
 0x56b   : > { %1443 = vxpose.xlu1.b32.start [1/16] (narrow) %v1426_v33, 32  ;;  %v1437_v5 = vmul.f32 %v1404_v54, %v1341_v51 }
 0x56f   : > { %v1364_v37 = vpop.permute.xlu1 %1363 }
 0x570   : > { %v1354_v17 = vpop.permute.xlu0 %1353  ;;  %v1429_v20 = vmul.f32 %v1364_v37, %v1333_v61 }
 0x571   : > { %v1427_v34 = vmul.f32 %v1354_v17, %v1331_v6 }
 0x572   : > { %v1419_v10 = vpop.permute.xlu2 %1418 }
 0x573   : > { %1444 = vxpose.xlu1.b32.cont [2/16] (narrow) %v1427_v34, 32  ;;  %v1440_v35 = vmul.f32 %v1419_v10, %v1344_v39 }
 0x577   : > { %v1384_v46 = vpop.permute.xlu1 %1383 }
 0x578   : > { %v1379_v38 = vpop.permute.xlu0 %1378  ;;  %v1433_v43 = vmul.f32 %v1384_v46, %v1337_v22 }
 0x579   : > { %v1432_v8 = vmul.f32 %v1379_v38, %v1336_v41 }
 0x57b   : > { %1445 = vxpose.xlu1.b32.cont [3/16] (narrow) %v1428_v60, 32 }
 0x57f   : > { %v1399_v24 = vpop.permute.xlu1 %1398 }
 0x580   : > { %v1394_v59 = vpop.permute.xlu0 %1393  ;;  %v1436_v3 = vmul.f32 %v1399_v24, %v1340_v28 }
 0x581   : > { %v1435_v63 = vmul.f32 %v1394_v59, %v1339_v50 }
 0x583   : > { %1446 = vxpose.xlu1.b32.cont [4/16] (narrow) %v1429_v20, 32 }
 0x587   : > { %v1414_v62 = vpop.permute.xlu1 %1413 }
 0x588   : > { %v1409_v30 = vpop.permute.xlu0 %1408  ;;  %v1439_v13 = vmul.f32 %v1414_v62, %v1343_v40 }
 0x589   : > { %v1438_v58 = vmul.f32 %v1409_v30, %v1342_v32 }
 0x58b   : > { %1447 = vxpose.xlu1.b32.cont [5/16] (narrow) %v1430_v1, 32 }
 0x590   : > { %v1424_v21 = vpop.permute.xlu0 %1423 }
 0x591   : > { %v1441_v29 = vmul.f32 %v1424_v21, %v1345_v47 }
 0x593   : > { %1448 = vxpose.xlu1.b32.cont [6/16] (narrow) %v1431_v11, 32 }
 0x59b   : > { %1449 = vxpose.xlu1.b32.cont [7/16] (narrow) %v1432_v8, 32 }
 0x5a3   : > { %1450 = vxpose.xlu1.b32.cont [8/16] (narrow) %v1433_v43, 32 }
 0x5ab   : > { %1451 = vxpose.xlu1.b32.cont [9/16] (narrow) %v1434_v25, 32 }
 0x5b3   : > { %1452 = vxpose.xlu1.b32.cont [10/16] (narrow) %v1435_v63, 32 }
 0x5bb   : > { %1453 = vxpose.xlu1.b32.cont [11/16] (narrow) %v1436_v3, 32 }
 0x5c3   : > { %1454 = vxpose.xlu1.b32.cont [12/16] (narrow) %v1437_v5, 32 }
 0x5cb   : > { %1455 = vxpose.xlu1.b32.cont [13/16] (narrow) %v1438_v58, 32 }
 0x5d3   : > { %1456 = vxpose.xlu1.b32.cont [14/16] (narrow) %v1439_v13, 32 }
 0x5db   : > { %1457 = vxpose.xlu1.b32.cont [15/16] (narrow) %v1440_v35, 32 }
 0x5e3   : > { %1458 = vxpose.xlu1.b32.end [16/16] (narrow) %v1441_v29, 32 }
 0x60f   : > { %v1459_v12 = vpop.trf.xlu1 }
 0x610   : > { %v1476_v26 = vmul.f32 %v1475_v2, %v1459_v12 }
 0x612   : > { %v1484_v14 = vadd.f32 %v1480_v7, %v1476_v26 }
 0x614   : > { %1488 = vst [vmem:[%s2411_s17] sm:$0xff] %v1484_v14 }
 0x617   : > { %v1460_v36 = vpop.trf.xlu1 }
 0x618   : > { %v1477_v18 = vmul.f32 %v1475_v2, %v1460_v36 }
 0x61a   : > { %v1485_v45 = vadd.f32 %v1481_v27, %v1477_v18 }
 0x61c   : > { %1489 = vst [vmem:[%s2411_s17 + $0x8] sm:$0xff] %v1485_v45 }
 0x61f   : > { %v1461_v15 = vpop.trf.xlu1 }
 0x620   : > { %v1478_v16 = vmul.f32 %v1475_v2, %v1461_v15 }
 0x622   : > { %v1486_v9 = vadd.f32 %v1482_v49, %v1478_v16 }
 0x624   : > { %1490 = vst [vmem:[%s2411_s17 + $0x10] sm:$0xff] %v1486_v9 }
 0x627   : > { %v1462_v23 = vpop.trf.xlu1 }
 0x628   : > { %v1479_v19 = vmul.f32 %v1475_v2, %v1462_v23 }
 0x62a   : > { %v1487_v52 = vadd.f32 %v1483_v0, %v1479_v19 }
 0x62c   : > { %1491 = vst [vmem:[%s2411_s17 + $0x18] sm:$0xff] %v1487_v52 }
 0x62d PF: > { %s2967_s25 = sld [smem:[#allocation18_spill]]  ;;  %s1506_s11 = sshll.u32 %s2411_s17, 4  ;;  %s1507_s11 = int_to_ptr.vmem [resolvable:$true] %s1506_s11 }
 0x62e   : > { %s2968_s18 = sld [smem:[#allocation17_spill]]  ;;  %s1493_s23 = scalar_lea.sflag [#allocation9], %s2394_s10 }
 0x62f   : > { %s2970_s0 = sld [smem:[#allocation30_spill]] }
 0x633   : > { %s1697_s1 = sshll.u32 %s2967_s25, 3 }
 0x634   : > { %s1503_s16 = sadd.s32 %s2968_s18, %s1697_s1 }
 0x635   : > { %s1698_s5 = sshll.u32 %s1503_s16, 3  ;;  %s2971_s21 = smov %s2970_s0 }
 0x636   : > { %s1505_s22 = scalar_lea.hbm %s2970_s0, %s1698_s5  ;;  %s2032_s17 = scalar_lea.hbm %s2971_s21, 128 }
 0x637   : > { %s1508_s12 = sshll.u32 %s1505_s22, 4  ;;  %s1509_s12 = int_to_ptr.hbm [resolvable:$true] %s1508_s12 }
 0x638   : > { %s2026_s24 = sshra.s32 %s1509_s12, 4  ;;  %s2027_s24 = int_to_ptr.hbm [resolvable:$true] %s2026_s24 }
 0x639   : > { %s2028_s19 = scalar_lea.hbm %s2027_s24, 32  ;;  %p2033_p6 = scmp.lt.s32.totalorder %s2027_s24, %s2971_s21 }
 0x63a   : > { %p2029_p0 = scmp.ne.s32.totalorder %s2027_s24, %s2028_s19  ;;  %p2034_p11 = scmp.lt.s32.totalorder %s2032_s17, %s2028_s19 }
 0x63c   : > { %p2030_p4 = pnand %p2029_p0, %p2300_p8  ;;  %p2035_p12 = por %p2034_p11, %p2033_p6 }
 0x63e   : > { %p2031_p5 = pneg %p2030_p4 }
 0x640   : > { %p2036_p3 = pnand %p2035_p12, %p2031_p5 }
 0x642   : > { %2039 = shalt.err (!%p2036_p3)
}
 0x643   : > { %s2164_s10 = smov 128   ;;  %s2165_s16 = smov 256  }
 0x644   : > { %s2166_s5 = smov 8  }
 0x645   : > { %1719 = dma.vmem_to_hbm [thread:$0]  (%p2300_p8), %s1507_s11, 512, %s1509_s12, %s1493_s23, %s2164_s10, %s2165_s16, %s2166_s5  }
 0x646 PF: > { %s2972_s15 = sld [smem:[#allocation16_spill]]  ;;  %p1733_p1 = scmp.ge.s32.totalorder %s2154_s14, 2 }
 0x648   : > { %p1729_p13 = pnand %p1733_p1, %p2304_p9 }
 0x64a   : > { %p1730_p2 = pneg %p1729_p13 }
 0x64c   : > { %s1523_s0 = sand.u32 1, %s2972_s15  }
 0x64d   : > { %s1524_s22 = scalar_lea.sflag [#allocation9], %s1523_s0 }
 0x64e   : > { %2101 = dma.done.wait (%p1730_p2), %s1524_s22, 512  }
 0x64f   : > { %2103 = vsyncadd (%p1730_p2), %s1524_s22, 4294966784  ;;  %s27_s14 = sadd.s32 1, %s2154_s14   ;;  %s2975_s9 = sld [smem:[#allocation19_spill]] }
 0x650   : > { %p2864_p10 = scmp.ge.s32.totalorder %s27_s14, 10   ;;  %s2976_s0 = sld [smem:[#allocation20_spill]] }
 0x651   : > { %s2977_s11 = sld [smem:[#allocation23_spill]]  ;;  %s2979_s7 = smov %s2997_s26 }
 0x652   : > { %s2978_s12 = sld [smem:[#allocation24_spill]]  ;;  %s2980_s26 = smov %s2110_s27 }
 0x653   : > { %s2981_s27 = smov %s2114_s28  ;;  %s2982_s28 = smov %s2382_s4 }
 0x654   : > { %s2983_s29 = smov %s2122_s30  ;;  %s2984_s30 = smov %s2126_s8 }
 0x655   : > { %s2985_s8 = smov %s2377_s3  ;;  %s2986_s10 = smov %s2150_s13 }
 0x656   : > { %s2987_s13 = smov %s2979_s7  ;;  %26 = sbr.rel (!%p2864_p10) target bundleno = 20 (0x14), region = 114 }
 0x65b   :  { %1530 = vsyncpa [#allocation8], 1 }
 0x65c   :  { %1532 = vsyncpa [#allocation8 + $0x1], 1 }
 0x65d   :  { %1533 = vsyncpa [#allocation11], 1 }
 0x65e   :  { %1535 = vsyncpa [#allocation11 + $0x1], 1 }
 0x65f   :  { %1536 = vsyncpa [#allocation9], 1 }
 0x660   :  { %1538 = vsyncpa [#allocation9 + $0x1], 1 }

</bundles_post_ra>
